<compile_context>
chip_gen: v5e
topology: v5e:2x2
jax: 0.10.0
libtpu: 0.0.40
codegen_flags: <defaults>
</compile_context>

<pallas_src>
import jax
import jax.numpy as jnp
import numpy as np
from jax import lax
from jax.experimental import pallas as pl
from jax.experimental.pallas import tpu as pltpu


# out = v @ attn.T without materializing attn.T: contract last dim of both
# (same dimension_numbers the official TPU flash-attention kernel uses).
TRANS_B_DIMS = (((1,), (1,)), ((), ()))


def mhsa_kernel(xw_ref, w_kqv_ref, b_kqv_ref, posT_ref, o_ref):
    B, C, N = o_ref.shape

    # Fused K/Q/V projection for the whole batch: (3C, C) @ (C, B*N) + (3C, 1).
    kqv = jnp.dot(w_kqv_ref[...], xw_ref[...],
                  preferred_element_type=jnp.float32) + b_kqv_ref[...]

    posT = posT_ref[...]                                    # (N, C)

    for b in range(B):                                      # B=2, static unroll
        sl = slice(b * N, (b + 1) * N)                      # 128-lane aligned
        kq = kqv[0:2 * C, sl]                               # (2C, N) = [k; q]
        q = kqv[C:2 * C, sl]                                # (C, N)
        v = kqv[2 * C:3 * C, sl]                            # (C, N)

        # energy[i,j] = sum_c q[c,i]*k[c,j] + sum_c pos[c,i]*q[c,j]
        # done as a single K=2C contraction; only a tiny (C,N)->(N,C)
        # transpose of q is needed (pos is pre-transposed in the wrapper).
        qpT = jnp.concatenate([q.T, posT], axis=1)          # (N, 2C)
        energy = jnp.dot(qpT, kq,
                         preferred_element_type=jnp.float32)  # (N, N)

        # softmax along the last (lane) axis; recip goes to the EUP slot.
        m = jnp.max(energy, axis=-1, keepdims=True)
        e = jnp.exp(energy - m)
        attn = e * pl.reciprocal(jnp.sum(e, axis=-1, keepdims=True),
                                 approx=True)               # (N, N)

        # out[c,i] = sum_j v[c,j] * attn[i,j]  — MXU consumes attn directly.
        out_b = lax.dot_general(v, attn, TRANS_B_DIMS,
                                preferred_element_type=jnp.float32)  # (C, N)
        o_ref[b] = out_b.astype(o_ref.dtype)


@jax.jit
def mhsa_forward(x, params):
    """x: (B, C, H, W) float32 (NCHW, same as the PyTorch module)."""
    B, C, H, W = x.shape
    N = H * W

    # Lane-widened input layout (C, B*N): the QKV projection runs once over
    # the whole batch.  Pure layout plumbing, done by XLA outside the kernel.
    xw = jnp.transpose(x.reshape(B, C, N), (1, 0, 2)).reshape(C, B * N)

    # positional term (rel_h + rel_w).view(C, N), pre-transposed to (N, C).
    posT = (params["rel_h"] + params["rel_w"]).reshape(C, N).T

    # stacked projection: [Wk; Wq; Wv] so the kernel's [k; q] operand is a
    # contiguous (2C, N) slice of the projection result (one sublane group).
    w_kqv = jnp.concatenate([params["wk"], params["wq"], params["wv"]], axis=0)
    b_kqv = jnp.concatenate([params["bk"], params["bq"], params["bv"]],
                            axis=0).reshape(3 * C, 1)

    vmem = pl.BlockSpec(memory_space=pltpu.MemorySpace.VMEM)
    out_flat = pl.pallas_call(
        mhsa_kernel,
        out_shape=jax.ShapeDtypeStruct((B, C, N), x.dtype),
        in_specs=[vmem, vmem, vmem, vmem],
        out_specs=vmem,
    )(xw, w_kqv, b_kqv, posT)

    return out_flat.reshape(B, C, H, W)


def mhsa_reference(x, params):
    """Pure-JAX reference mirroring the PyTorch forward exactly."""
    B, C, H, W = x.shape
    N = H * W
    xf = x.reshape(B, C, N)
    q = jnp.einsum("oc,bcn->bon", params["wq"], xf) + params["bq"][None, :, None]
    k = jnp.einsum("oc,bcn->bon", params["wk"], xf) + params["bk"][None, :, None]
    v = jnp.einsum("oc,bcn->bon", params["wv"], xf) + params["bv"][None, :, None]
    cc = jnp.einsum("bcn,bcm->bnm", q, k)
    pos = (params["rel_h"] + params["rel_w"]).reshape(1, C, N)
    cp = jnp.einsum("pcn,bcm->bnm", pos, q)
    energy = cc + cp
    attn = jax.nn.softmax(energy, axis=-1)
    out = jnp.einsum("bcn,bmn->bcm", v, attn)
    return out.reshape(B, C, H, W)


def init_params(key, n_dims, size):
    """Deterministic synthetic init (shapes match nn.Conv2d(k=1) + rel params)."""
    ks = jax.random.split(key, 8)
    s = 1.0 / np.sqrt(n_dims)
    return {
        "wq": jax.random.uniform(ks[0], (n_dims, n_dims), jnp.float32, -s, s),
        "bq": jax.random.uniform(ks[1], (n_dims,), jnp.float32, -s, s),
        "wk": jax.random.uniform(ks[2], (n_dims, n_dims), jnp.float32, -s, s),
        "bk": jax.random.uniform(ks[3], (n_dims,), jnp.float32, -s, s),
        "wv": jax.random.uniform(ks[4], (n_dims, n_dims), jnp.float32, -s, s),
        "bv": jax.random.uniform(ks[5], (n_dims,), jnp.float32, -s, s),
        "rel_h": jax.random.normal(ks[6], (1, n_dims, size, 1), jnp.float32),
        "rel_w": jax.random.normal(ks[7], (1, n_dims, 1, size), jnp.float32),
    }


if __name__ == "__main__":
    B, C, SIZE = 2, 4, 16   # x: (2, 4, 16, 16), N = 256
    key = jax.random.PRNGKey(0)
    kx, kp = jax.random.split(key)
    x = jax.random.normal(kx, (B, C, SIZE, SIZE), jnp.float32)
    params = init_params(kp, C, SIZE)

    out = jax.block_until_ready(mhsa_forward(x, params))
    ref = jax.block_until_ready(mhsa_reference(x, params))

    # approx (EUP) reciprocal in the softmax denominator has ~2^-12 relative
    # error, so the tolerance is slightly looser than the exact-recip version.
    np.testing.assert_allclose(np.asarray(out), np.asarray(ref),
                               rtol=2e-3, atol=2e-3)
    print("KERNEL_OK")
</pallas_src>

<mosaic_0001>
module attributes {stable_mosaic.version = 11 : i64} {
  func.func @mhsa_kernel(%arg0: memref<4x512xf32, #tpu.memory_space<vmem>>, %arg1: memref<12x4xf32, #tpu.memory_space<vmem>>, %arg2: memref<12x1xf32, #tpu.memory_space<vmem>>, %arg3: memref<256x4xf32, #tpu.memory_space<vmem>>, %arg4: memref<2x4x256xf32, #tpu.memory_space<vmem>>) attributes {dimension_semantics = [], scalar_prefetch = 0 : i64, scratch_operands = 0 : i64, tpu.core_type = #tpu.core_type<tc>} {
    %c0 = arith.constant 0 : index
    %c0_0 = arith.constant 0 : index
    %0 = vector.load %arg1[%c0, %c0_0] : memref<12x4xf32, #tpu.memory_space<vmem>>, vector<12x4xf32>
    %c0_1 = arith.constant 0 : index
    %c0_2 = arith.constant 0 : index
    %1 = vector.load %arg0[%c0_1, %c0_2] : memref<4x512xf32, #tpu.memory_space<vmem>>, vector<4x512xf32>
    %cst = arith.constant dense<0.000000e+00> : vector<12x512xf32>
    %2 = tpu.matmul %0, %1, %cst {dimension_numbers = #tpu.dot_dimension_numbers<[1], [0], [0], [1], [0, 0, 1, 1], [], []>} : vector<12x4xf32>, vector<4x512xf32>, vector<12x512xf32> -> vector<12x512xf32>
    %c0_3 = arith.constant 0 : index
    %c0_4 = arith.constant 0 : index
    %3 = vector.load %arg2[%c0_3, %c0_4] : memref<12x1xf32, #tpu.memory_space<vmem>>, vector<12x1xf32>
    %4 = vector.broadcast %3 : vector<12x1xf32> to vector<12x512xf32>
    %5 = arith.addf %2, %4 : vector<12x512xf32>
    %c0_5 = arith.constant 0 : index
    %c0_6 = arith.constant 0 : index
    %6 = vector.load %arg3[%c0_5, %c0_6] : memref<256x4xf32, #tpu.memory_space<vmem>>, vector<256x4xf32>
    %7 = vector.extract_strided_slice %5 {offsets = [0, 0], sizes = [8, 256], strides = [1, 1]} : vector<12x512xf32> to vector<8x256xf32>
    %8 = vector.extract_strided_slice %5 {offsets = [4, 0], sizes = [4, 256], strides = [1, 1]} : vector<12x512xf32> to vector<4x256xf32>
    %9 = vector.extract_strided_slice %5 {offsets = [8, 0], sizes = [4, 256], strides = [1, 1]} : vector<12x512xf32> to vector<4x256xf32>
    %10 = tpu.transpose %8, [1, 0] : vector<4x256xf32> -> vector<256x4xf32>
    %11 = tpu.concatenate %10, %6 in 1 : vector<256x4xf32>, vector<256x4xf32> -> vector<256x8xf32>
    %cst_7 = arith.constant dense<0.000000e+00> : vector<256x256xf32>
    %12 = tpu.matmul %11, %7, %cst_7 {dimension_numbers = #tpu.dot_dimension_numbers<[1], [0], [0], [1], [0, 0, 1, 1], [], []>} : vector<256x8xf32>, vector<8x256xf32>, vector<256x256xf32> -> vector<256x256xf32>
    %cst_8 = arith.constant dense<0xFF800000> : vector<256xf32>
    %13 = vector.multi_reduction <maximumf>, %12, %cst_8 [1] : vector<256x256xf32> to vector<256xf32>
    %14 = vector.shape_cast %13 : vector<256xf32> to vector<256x1xf32>
    %15 = vector.broadcast %14 : vector<256x1xf32> to vector<256x256xf32>
    %16 = arith.subf %12, %15 : vector<256x256xf32>
    %17 = math.exp %16 : vector<256x256xf32>
    %cst_9 = arith.constant dense<0.000000e+00> : vector<256xf32>
    %18 = vector.multi_reduction <add>, %17, %cst_9 [1] : vector<256x256xf32> to vector<256xf32>
    %19 = vector.shape_cast %18 : vector<256xf32> to vector<256x1xf32>
    %20 = tpu.reciprocal %19 {approx = true} : vector<256x1xf32> -> vector<256x1xf32>
    %21 = vector.broadcast %20 : vector<256x1xf32> to vector<256x256xf32>
    %22 = arith.mulf %17, %21 : vector<256x256xf32>
    %cst_10 = arith.constant dense<0.000000e+00> : vector<4x256xf32>
    %23 = tpu.matmul %9, %22, %cst_10 {dimension_numbers = #tpu.dot_dimension_numbers<[1], [1], [0], [0], [0, 0, 1, 0], [], []>} : vector<4x256xf32>, vector<256x256xf32>, vector<4x256xf32> -> vector<4x256xf32>
    %c0_11 = arith.constant 0 : index
    %c0_12 = arith.constant 0 : index
    %c0_13 = arith.constant 0 : index
    %24 = vector.load %arg4[%c0_11, %c0_12, %c0_13] : memref<2x4x256xf32, #tpu.memory_space<vmem>>, vector<1x4x256xf32>
    %25 = vector.shape_cast %24 : vector<1x4x256xf32> to vector<4x256xf32>
    %26 = vector.shape_cast %23 : vector<4x256xf32> to vector<1x4x256xf32>
    tpu.vector_store %arg4[%c0_11, %c0_12, %c0_13], %26 {strides = array<i32>} : memref<2x4x256xf32, #tpu.memory_space<vmem>>, vector<1x4x256xf32>,
    %27 = vector.extract_strided_slice %5 {offsets = [0, 256], sizes = [8, 256], strides = [1, 1]} : vector<12x512xf32> to vector<8x256xf32>
    %28 = vector.extract_strided_slice %5 {offsets = [4, 256], sizes = [4, 256], strides = [1, 1]} : vector<12x512xf32> to vector<4x256xf32>
    %29 = vector.extract_strided_slice %5 {offsets = [8, 256], sizes = [4, 256], strides = [1, 1]} : vector<12x512xf32> to vector<4x256xf32>
    %30 = tpu.transpose %28, [1, 0] : vector<4x256xf32> -> vector<256x4xf32>
    %31 = tpu.concatenate %30, %6 in 1 : vector<256x4xf32>, vector<256x4xf32> -> vector<256x8xf32>
    %cst_14 = arith.constant dense<0.000000e+00> : vector<256x256xf32>
    %32 = tpu.matmul %31, %27, %cst_14 {dimension_numbers = #tpu.dot_dimension_numbers<[1], [0], [0], [1], [0, 0, 1, 1], [], []>} : vector<256x8xf32>, vector<8x256xf32>, vector<256x256xf32> -> vector<256x256xf32>
    %cst_15 = arith.constant dense<0xFF800000> : vector<256xf32>
    %33 = vector.multi_reduction <maximumf>, %32, %cst_15 [1] : vector<256x256xf32> to vector<256xf32>
    %34 = vector.shape_cast %33 : vector<256xf32> to vector<256x1xf32>
    %35 = vector.broadcast %34 : vector<256x1xf32> to vector<256x256xf32>
    %36 = arith.subf %32, %35 : vector<256x256xf32>
    %37 = math.exp %36 : vector<256x256xf32>
    %cst_16 = arith.constant dense<0.000000e+00> : vector<256xf32>
    %38 = vector.multi_reduction <add>, %37, %cst_16 [1] : vector<256x256xf32> to vector<256xf32>
    %39 = vector.shape_cast %38 : vector<256xf32> to vector<256x1xf32>
    %40 = tpu.reciprocal %39 {approx = true} : vector<256x1xf32> -> vector<256x1xf32>
    %41 = vector.broadcast %40 : vector<256x1xf32> to vector<256x256xf32>
    %42 = arith.mulf %37, %41 : vector<256x256xf32>
    %cst_17 = arith.constant dense<0.000000e+00> : vector<4x256xf32>
    %43 = tpu.matmul %29, %42, %cst_17 {dimension_numbers = #tpu.dot_dimension_numbers<[1], [1], [0], [0], [0, 0, 1, 0], [], []>} : vector<4x256xf32>, vector<256x256xf32>, vector<4x256xf32> -> vector<4x256xf32>
    %c1 = arith.constant 1 : index
    %c0_18 = arith.constant 0 : index
    %c0_19 = arith.constant 0 : index
    %44 = vector.load %arg4[%c1, %c0_18, %c0_19] : memref<2x4x256xf32, #tpu.memory_space<vmem>>, vector<1x4x256xf32>
    %45 = vector.shape_cast %44 : vector<1x4x256xf32> to vector<4x256xf32>
    %46 = vector.shape_cast %43 : vector<4x256xf32> to vector<1x4x256xf32>
    tpu.vector_store %arg4[%c1, %c0_18, %c0_19], %46 {strides = array<i32>} : memref<2x4x256xf32, #tpu.memory_space<vmem>>, vector<1x4x256xf32>,
    return
  }
}

</mosaic_0001>

<bundles_post_ra>
// kernel: mhsa_forward.1
= control target key start
LH: loop header
LB: loop body
LE: loop exit
PB: predicated region body
PF: predicated region fallthrough
CT: control target
= control target key end

     0   :  { %v2825_v1 = vmov 0   ;;  %s2826_s21 = smov 4   ;;  %vm49_vm0 = vcmask 1043456   ;;  %vm42_vm1 = vcmask 31744   ;;  %vm412_vm2 = vcmask 64512   ;;  %s4633_s0 = inlined_call_operand.vmem [shape: f32[4,512], index: 0, kind: input, shape index: {}]   ;;  %s4634_s2 = inlined_call_operand.vmem [shape: f32[12,1], index: 2, kind: input, shape index: {}]   ;;  %s4635_s3 = inlined_call_operand.vmem [shape: f32[256,4], index: 3, kind: input, shape index: {}]   ;;  %s4636_s1 = inlined_call_operand.vmem [shape: f32[12,4], index: 1, kind: input, shape index: {}]   ;;  %s4637_s4 = inlined_call_operand.vmem [shape: f32[2,4,256], index: 4, kind: output, shape index: {}]  }
   0x1   :  { %v19_v0 = vld [vmem:[%s4633_s0] sm:$0xff]  ;;  %2440 = vset.pattern.permute.xlu0 %v2825_v1  ;;  %v151_v3 = vld [vmem:[%s4635_s3 + $0x8] sm:$0xff]  ;;  %v152_v8 = vld [vmem:[%s4635_s3 + $0x10] sm:$0xff] }
   0x2   :  { %35 = vst [vmem:[#allocation1] ss:$2 sm:$0xff] %v19_v0  ;;  %v21_v2 = vld [vmem:[%s4634_s2] sm:$0xff]  ;;  %286 = vrot.lane.b32.xlu1 %v151_v3, %s2826_s21  ;;  %v20_v4 = vld [vmem:[%s4633_s0 + $0x8] sm:$0xff]  ;;  %v157_v13 = vld [vmem:[%s4635_s3 + $0x38] sm:$0xff] }
   0x3   :  { %25 = vperm.xlu0 %2440, %v21_v2   ;;  %37 = vst [vmem:[#allocation1 + $0x10] ss:$2 sm:$0xff] %v20_v4  ;;  %v17_v5 = vld [vmem:[%s4636_s1] sm:$0xff]  ;;  %v18_v11 = vld [vmem:[%s4636_s1 + $0x8] sm:$0xf]  ;;  %v161_v15 = vld [vmem:[%s4635_s3 + $0x58] sm:$0xff] }
   0x4   :  { %v155_v12 = vld [vmem:[%s4635_s3 + $0x28] sm:$0xff]  ;;  %v165_v17 = vld [vmem:[%s4635_s3 + $0x78] sm:$0xff]  ;;  %v150_v19 = vld [vmem:[%s4635_s3] sm:$0xff] }
   0x5   :  { %v159_v14 = vld [vmem:[%s4635_s3 + $0x48] sm:$0xff]  ;;  %v154_v20 = vld [vmem:[%s4635_s3 + $0x20] sm:$0xff]  ;;  %v156_v26 = vld [vmem:[%s4635_s3 + $0x30] sm:$0xff] }
   0x6   :  { %v163_v16 = vld [vmem:[%s4635_s3 + $0x68] sm:$0xff]  ;;  %v158_v29 = vld [vmem:[%s4635_s3 + $0x40] sm:$0xff]  ;;  %v160_v30 = vld [vmem:[%s4635_s3 + $0x50] sm:$0xff] }
   0x7   :  { %v167_v18 = vld [vmem:[%s4635_s3 + $0x88] sm:$0xff]  ;;  %v162_v31 = vld [vmem:[%s4635_s3 + $0x60] sm:$0xff]  ;;  %v164_v32 = vld [vmem:[%s4635_s3 + $0x70] sm:$0xff] }
   0x8   :  { %v166_v45 = vld [vmem:[%s4635_s3 + $0x80] sm:$0xff]  ;;  %v153_v47 = vld [vmem:[%s4635_s3 + $0x18] sm:$0xff]  ;;  %v168_v48 = vld [vmem:[%s4635_s3 + $0x90] sm:$0xff] }
   0x9   :  { %v38_v6 = vld.sshfl [vmem:[#allocation1] sm:$0xff pattern:$0x75316420]  ;;  %v39_v7 = vld.sshfl [vmem:[#allocation1 + $0x8] sm:$0xff pattern:$0x75316420] }
   0xa   :  { %2296 = vmatpush.msk.msra.mxu0 %vm49_vm0, %v38_v6  ;;  %2299 = vmatpush.msk.msra.mxu1 %vm49_vm0, %v39_v7  ;;  %v40_v9 = vld.sshfl [vmem:[#allocation1 + $0x10] sm:$0xff pattern:$0x75316420]  ;;  %v41_v10 = vld.sshfl [vmem:[#allocation1 + $0x18] sm:$0xff pattern:$0x75316420] }
   0xb   :  { %2297 = vmatmul.msk.f32.vlgmr.msra.gmra.mxu0 %vm42_vm1, %v17_v5  ;;  %2300 = vmatmul.msk.f32.vlgmr.msra.gmra.mxu1 %vm42_vm1, %v17_v5  ;;  %v169_v50 = vld [vmem:[%s4635_s3 + $0x98] sm:$0xff]  ;;  %v170_v53 = vld [vmem:[%s4635_s3 + $0xa0] sm:$0xff]  ;;  %v171_v56 = vld [vmem:[%s4635_s3 + $0xa8] sm:$0xff] }
   0xc   :  { %2302 = vmatpush.msk.msrb.mxu0 %vm49_vm0, %v40_v9  ;;  %2305 = vmatpush.msk.msrb.mxu1 %vm49_vm0, %v41_v10  ;;  %v172_v61 = vld [vmem:[%s4635_s3 + $0xb0] sm:$0xff]  ;;  %v173_v1 = vld [vmem:[%s4635_s3 + $0xb8] sm:$0xff]  ;;  %v174_v4 = vld [vmem:[%s4635_s3 + $0xc0] sm:$0xff] }
   0xd   :  { %288 = vrot.lane.b32.xlu1 %v152_v8, %s2826_s21  ;;  %284 = vrot.lane.b32.xlu0 %v150_v19, %s2826_s21  ;;  %v175_v8 = vld [vmem:[%s4635_s3 + $0xc8] sm:$0xff]  ;;  %v177_v19 = vld [vmem:[%s4635_s3 + $0xd8] sm:$0xff] }
  0x13   :  { %2298 = vmatmul.msk.f32.gmra.mxu0 %vm42_vm1, %v18_v11  ;;  %2301 = vmatmul.msk.f32.gmra.mxu1 %vm42_vm1, %v18_v11 }
  0x15   :  { %294 = vrot.lane.b32.xlu1 %v155_v12, %s2826_s21  ;;  %292 = vrot.lane.b32.xlu0 %v154_v20, %s2826_s21 }
  0x1b   :  { %2303 = vmatmul.msk.f32.vlgmr.msrb.gmra.mxu0 %vm42_vm1, %v17_v5  ;;  %2306 = vmatmul.msk.f32.vlgmr.msrb.gmra.mxu1 %vm42_vm1, %v17_v5 }
  0x1d   :  { %298 = vrot.lane.b32.xlu1 %v157_v13, %s2826_s21  ;;  %296 = vrot.lane.b32.xlu0 %v156_v26, %s2826_s21  ;;  %v176_v13 = vld [vmem:[%s4635_s3 + $0xd0] sm:$0xff]  ;;  %v179_v26 = vld [vmem:[%s4635_s3 + $0xe8] sm:$0xff] }
  0x23   :  { %2304 = vmatmul.msk.f32.gmra.mxu0 %vm42_vm1, %v18_v11  ;;  %2307 = vmatmul.msk.f32.gmra.mxu1 %vm42_vm1, %v18_v11 }
  0x25   :  { %302 = vrot.lane.b32.xlu1 %v159_v14, %s2826_s21  ;;  %300 = vrot.lane.b32.xlu0 %v158_v29, %s2826_s21 }
  0x2d   :  { %306 = vrot.lane.b32.xlu1 %v161_v15, %s2826_s21  ;;  %304 = vrot.lane.b32.xlu0 %v160_v30, %s2826_s21  ;;  %v180_v30 = vld [vmem:[%s4635_s3 + $0xf0] sm:$0xff] }
  0x35   :  { %310 = vrot.lane.b32.xlu1 %v163_v16, %s2826_s21  ;;  %308 = vrot.lane.b32.xlu0 %v162_v31, %s2826_s21 }
  0x3d   :  { %314 = vrot.lane.b32.xlu1 %v165_v17, %s2826_s21  ;;  %312 = vrot.lane.b32.xlu0 %v164_v32, %s2826_s21 }
  0x45   :  { %318 = vrot.lane.b32.xlu1 %v167_v18, %s2826_s21  ;;  %316 = vrot.lane.b32.xlu0 %v166_v45, %s2826_s21 }
  0x4d   :  { %320 = vrot.lane.b32.xlu0 %v168_v48, %s2826_s21 }
  0x55   :  { %322 = vrot.lane.b32.xlu0 %v169_v50, %s2826_s21 }
  0x5d   :  { %324 = vrot.lane.b32.xlu0 %v170_v53, %s2826_s21 }
  0x65   :  { %326 = vrot.lane.b32.xlu0 %v171_v56, %s2826_s21 }
  0x6d   :  { %328 = vrot.lane.b32.xlu0 %v172_v61, %s2826_s21 }
  0x74   :  { %v2953_v36 = vpop.permute.xlu1 %286 }
  0x75   :  { %v2923_v21 = vpop.permute.xlu0 %25  ;;  %4738 = vst [vmem:[#allocation4_spill] sm:$0xff] %v2953_v36  ;;  %330 = vrot.lane.b32.xlu0 %v173_v1, %s2826_s21 }
  0x76   :  { %4736 = vst [vmem:[#allocation2_spill] sm:$0xff] %v2923_v21 }
  0x7d   :  { %332 = vrot.lane.b32.xlu0 %v174_v4, %s2826_s21 }
  0x7f   :  { %v2947_v33 = vpop.permute.xlu0 %284  ;;  %v2959_v39 = vpop.permute.xlu1 %288 }
  0x80   :  { %4737 = vst [vmem:[#allocation3_spill] sm:$0xff] %v2947_v33 }
  0x81   :  { %4739 = vst [vmem:[#allocation5_spill] sm:$0xff] %v2959_v39 }
  0x85   :  { %336 = vrot.lane.b32.xlu0 %v176_v13, %s2826_s21 }
  0x87   :  { %v3007_v58 = vpop.permute.xlu1 %294 }
  0x88   :  { %v75_v22 = vpop.f32.mrf.mxu0  ;;  %v98_v23 = vpop.f32.mrf.mxu1  ;;  %4742 = vst [vmem:[#allocation8_spill] sm:$0xff] %v3007_v58 }
  0x89   :  { %v76_v24 = vadd.f32 %v75_v22, %v2923_v21  ;;  %v99_v25 = vadd.f32 %v98_v23, %v2923_v21  ;;  %v178_v22 = vld [vmem:[%s4635_s3 + $0xe0] sm:$0xff] }
  0x8b   :  { %524 = vmatpush.msra.mxu0 %v76_v24  ;;  %637 = vmatpush.msra.mxu1 %v99_v25  ;;  %v185_v27 = vrot.slane %v99_v25, 4  ;;  %v184_v28 = vrot.slane %v76_v24, 4 }
  0x8d   :  { %220 = vxpose.xlu1.b32.start.end [1/1] (short) %v185_v27, 128  ;;  %188 = vxpose.xlu2.b32.start.end [1/1] (short) %v184_v28, 128  ;;  %v3091_v28 = vpop.permute.xlu0 %292 }
  0x8e   :  { %338 = vrot.lane.b32.xlu0 %v177_v19, %s2826_s21  ;;  %4756 = vst [vmem:[#allocation22_spill] sm:$0xff] %v3091_v28 }
  0x8f   :  { %v3026_v2 = vpop.permute.xlu1 %298 }
  0x90   :  { %v2997_v54 = vpop.f32.mrf.mxu0  ;;  %v2999_v55 = vpop.f32.mrf.mxu1  ;;  %4747 = vst [vmem:[#allocation13_spill] sm:$0xff] %v3026_v2 }
  0x91   :  { %4740 = vst [vmem:[#allocation6_spill] sm:$0xff] %v2997_v54 }
  0x92   :  { %4741 = vst [vmem:[#allocation7_spill] sm:$0xff] %v2999_v55 }
  0x96   :  { %340 = vrot.lane.b32.xlu0 %v178_v22, %s2826_s21 }
  0x97   :  { %v3038_v7 = vpop.permute.xlu1 %302 }
  0x98   :  { %v3009_v59 = vpop.f32.mrf.mxu0  ;;  %v3011_v60 = vpop.f32.mrf.mxu1  ;;  %4748 = vst [vmem:[#allocation14_spill] sm:$0xff] %v3038_v7 }
  0x99   :  { %4743 = vst [vmem:[#allocation9_spill] sm:$0xff] %v3009_v59 }
  0x9a   :  { %4744 = vst [vmem:[#allocation10_spill] sm:$0xff] %v3011_v60 }
  0x9e   :  { %342 = vrot.lane.b32.xlu0 %v179_v26, %s2826_s21 }
  0x9f   :  { %v3051_v12 = vpop.permute.xlu1 %306 }
  0xa0   :  { %v3019_v63 = vpop.f32.mrf.mxu0  ;;  %v3021_v0 = vpop.f32.mrf.mxu1  ;;  %4749 = vst [vmem:[#allocation15_spill] sm:$0xff] %v3051_v12 }
  0xa1   :  { %4745 = vst [vmem:[#allocation11_spill] sm:$0xff] %v3019_v63 }
  0xa2   :  { %4746 = vst [vmem:[#allocation12_spill] sm:$0xff] %v3021_v0 }
  0xa6   :  { %344 = vrot.lane.b32.xlu0 %v180_v30, %s2826_s21 }
  0xa7   :  { %v3065_v18 = vpop.permute.xlu1 %310 }
  0xa8   :  { %4752 = vst [vmem:[#allocation18_spill] sm:$0xff] %v3065_v18 }
  0xaf   :  { %v3077_v23 = vpop.permute.xlu1 %314 }
  0xb0   :  { %4753 = vst [vmem:[#allocation19_spill] sm:$0xff] %v3077_v23 }
  0xb7   :  { %v3089_v27 = vpop.permute.xlu1 %318 }
  0xb8   :  { %4755 = vst [vmem:[#allocation21_spill] sm:$0xff] %v3089_v27 }
 0x126   :  { %v204_v34 = vpop.trf.xlu2 }
 0x127   :  { %v380_v35 = vsel %vm42_vm1, %v204_v34, %v2947_v33  ;;  %v181_v34 = vld [vmem:[%s4635_s3 + $0xf8] sm:$0xff] }
 0x128   :  { %2308 = vmatmul.msk.f32.vlgmr.msra.gmra.mxu0 %vm412_vm2, %v380_v35  ;;  %2340 = vmatmul.msk.f32.vlgmr.msra.gmra.mxu1 %vm412_vm2, %v380_v35  ;;  %v3111_v35 = vpop.permute.xlu0 %296 }
 0x129   :  { %346 = vrot.lane.b32.xlu0 %v181_v34, %s2826_s21  ;;  %4757 = vst [vmem:[#allocation23_spill] sm:$0xff] %v3111_v35 }
 0x12e   :  { %v205_v37 = vpop.trf.xlu2 }
 0x12f   :  { %v381_v38 = vsel %vm42_vm1, %v205_v37, %v2953_v36 }
 0x130   :  { %2309 = vmatmul.msk.f32.gmra.mxu0 %vm412_vm2, %v381_v38  ;;  %2341 = vmatmul.msk.f32.gmra.mxu1 %vm412_vm2, %v381_v38 }
 0x131   :  { %v236_v31 = vpop.trf.xlu1 }
 0x136   :  { %v206_v40 = vpop.trf.xlu2 }
 0x137   :  { %v382_v41 = vsel %vm42_vm1, %v206_v40, %v2959_v39 }
 0x138   :  { %2310 = vmatmul.msk.f32.gmra.mxu0 %vm412_vm2, %v382_v41  ;;  %2342 = vmatmul.msk.f32.gmra.mxu1 %vm412_vm2, %v382_v41 }
 0x139   :  { %v237_v38 = vpop.trf.xlu1 }
 0x13e   :  { %v207_v42 = vpop.trf.xlu2 }
 0x141   :  { %v238_v41 = vpop.trf.xlu1 }
 0x146   :  { %v2965_v43 = vpop.trf.xlu2 }
 0x147   :  { %v384_v29 = vsel %vm42_vm1, %v2965_v43, %v3091_v28 }
 0x14e   :  { %v2967_v44 = vpop.trf.xlu2 }
 0x14f   :  { %v385_v32 = vsel %vm42_vm1, %v2967_v44, %v3007_v58  ;;  %v239_v44 = vpop.trf.xlu1 }
 0x156   :  { %v2973_v46 = vpop.trf.xlu2 }
 0x157   :  { %v386_v37 = vsel %vm42_vm1, %v2973_v46, %v3111_v35 }
 0x15e   :  { %v2983_v49 = vpop.trf.xlu2 }
 0x15f   :  { %334 = vrot.lane.b32.xlu1 %v175_v8, %s2826_s21  ;;  %v387_v40 = vsel %vm42_vm1, %v2983_v49, %v3026_v2 }
 0x166   :  { %v2989_v51 = vpop.trf.xlu2 }
 0x16e   :  { %290 = vrot.lane.b32.xlu2 %v153_v47, %s2826_s21  ;;  %v2991_v52 = vpop.trf.xlu2  ;;  %v240_v47 = vpop.trf.xlu1 }
 0x16f   :  { %v389_v45 = vsel %vm42_vm1, %v2991_v52, %v3038_v7 }
 0x176   :  { %v3004_v57 = vpop.trf.xlu2  ;;  %v241_v49 = vpop.trf.xlu1 }
 0x17e   :  { %v3017_v62 = vpop.trf.xlu2  ;;  %v242_v53 = vpop.trf.xlu1 }
 0x17f   :  { %v391_v50 = vsel %vm42_vm1, %v3017_v62, %v3051_v12 }
 0x186   :  { %v3029_v3 = vpop.trf.xlu2 }
 0x18e   :  { %v3045_v9 = vpop.trf.xlu2 }
 0x18f   :  { %v393_v56 = vsel %vm42_vm1, %v3045_v9, %v3065_v18 }
 0x196   :  { %v3061_v16 = vpop.trf.xlu2 }
 0x19e   :  { %v3071_v20 = vpop.trf.xlu2 }
 0x19f   :  { %v395_v4 = vsel %vm42_vm1, %v3071_v20, %v3077_v23 }
 0x1a5   :  { %v3034_v5 = vpop.f32.mrf.mxu0  ;;  %v3036_v6 = vpop.f32.mrf.mxu1 }
 0x1ad   :  { %v3047_v10 = vpop.f32.mrf.mxu0  ;;  %v3049_v11 = vpop.f32.mrf.mxu1 }
 0x1b5   :  { %v3057_v14 = vpop.f32.mrf.mxu0  ;;  %v3059_v15 = vpop.f32.mrf.mxu1 }
 0x1b6   :  { %4750 = vst [vmem:[#allocation16_spill] sm:$0xff] %v3057_v14  ;;  %v741_v17 = vmax.f32 %v3057_v14, %v3059_v15 }
 0x1b7   :  { %4751 = vst [vmem:[#allocation17_spill] sm:$0xff] %v3059_v15 }
 0x1b8   :  { %742 = vmax.xlane.f32.xlu2 %v741_v17 }
 0x1c8   :  { %v3079_v24 = vpop.permute.xlu2 %290 }
 0x1c9   :  { %4754 = vst [vmem:[#allocation20_spill] sm:$0xff] %v3079_v24  ;;  %v383_v25 = vsel %vm42_vm1, %v207_v42, %v3079_v24  ;;  %v3123_v42 = vpop.permute.xlu0 %300 }
 0x1ca   :  { %2311 = vmatmul.msk.f32.gmra.mxu0 %vm412_vm2, %v383_v25  ;;  %2343 = vmatmul.msk.f32.gmra.mxu1 %vm412_vm2, %v383_v25  ;;  %4758 = vst [vmem:[#allocation24_spill] sm:$0xff] %v3123_v42  ;;  %v388_v43 = vsel %vm42_vm1, %v2989_v51, %v3123_v42 }
 0x1d1   :  { %v3135_v46 = vpop.permute.xlu0 %304 }
 0x1d2   :  { %2312 = vmatmul.msk.f32.gmra.mxu0 %vm412_vm2, %v384_v29  ;;  %2344 = vmatmul.msk.f32.gmra.mxu1 %vm412_vm2, %v384_v29  ;;  %4759 = vst [vmem:[#allocation25_spill] sm:$0xff] %v3135_v46  ;;  %v390_v48 = vsel %vm42_vm1, %v3004_v57, %v3135_v46  ;;  %v3159_v57 = vpop.trf.xlu1 }
 0x1d9   :  { %v3147_v51 = vpop.permute.xlu0 %308 }
 0x1da   :  { %2313 = vmatmul.msk.f32.gmra.mxu0 %vm412_vm2, %v385_v32  ;;  %2345 = vmatmul.msk.f32.gmra.mxu1 %vm412_vm2, %v385_v32  ;;  %4760 = vst [vmem:[#allocation26_spill] sm:$0xff] %v3147_v51  ;;  %v392_v52 = vsel %vm42_vm1, %v3029_v3, %v3147_v51  ;;  %v3168_v1 = vpop.trf.xlu1 }
 0x1e1   :  { %v3161_v61 = vpop.permute.xlu0 %312 }
 0x1e2   :  { %2314 = vmatmul.msk.f32.gmra.mxu0 %vm412_vm2, %v386_v37  ;;  %2346 = vmatmul.msk.f32.gmra.mxu1 %vm412_vm2, %v386_v37  ;;  %4761 = vst [vmem:[#allocation27_spill] sm:$0xff] %v3161_v61  ;;  %v394_v62 = vsel %vm42_vm1, %v3061_v16, %v3161_v61  ;;  %v3179_v9 = vpop.trf.xlu1  ;;  %v397_v16 = vsel %vm42_vm1, %v237_v38, %v3089_v27 }
 0x1e9   :  { %v3170_v3 = vpop.permute.xlu0 %316 }
 0x1ea   :  { %2315 = vmatmul.msk.f32.gmra.mxu0 %vm412_vm2, %v387_v40  ;;  %2347 = vmatmul.msk.f32.gmra.mxu1 %vm412_vm2, %v387_v40  ;;  %4762 = vst [vmem:[#allocation28_spill] sm:$0xff] %v3170_v3  ;;  %v396_v13 = vsel %vm42_vm1, %v236_v31, %v3170_v3  ;;  %v3189_v19 = vpop.trf.xlu1 }
 0x1f1   :  { %v3177_v8 = vpop.permute.xlu0 %320 }
 0x1f2   :  { %2316 = vmatmul.msk.f32.gmra.mxu0 %vm412_vm2, %v388_v43  ;;  %2348 = vmatmul.msk.f32.gmra.mxu1 %vm412_vm2, %v388_v43  ;;  %4763 = vst [vmem:[#allocation29_spill] sm:$0xff] %v3177_v8  ;;  %v398_v20 = vsel %vm42_vm1, %v238_v41, %v3177_v8  ;;  %v3199_v25 = vpop.trf.xlu1 }
 0x1f9   :  { %v3187_v17 = vpop.permute.xlu0 %322 }
 0x1fa   :  { %2317 = vmatmul.msk.f32.gmra.mxu0 %vm412_vm2, %v389_v45  ;;  %2349 = vmatmul.msk.f32.gmra.mxu1 %vm412_vm2, %v389_v45  ;;  %4764 = vst [vmem:[#allocation30_spill] sm:$0xff] %v3187_v17  ;;  %v399_v31 = vsel %vm42_vm1, %v239_v44, %v3187_v17  ;;  %v3213_v34 = vpop.trf.xlu1 }
 0x201   :  { %v3197_v22 = vpop.permute.xlu0 %324 }
 0x202   :  { %2318 = vmatmul.msk.f32.gmra.mxu0 %vm412_vm2, %v390_v48  ;;  %2350 = vmatmul.msk.f32.gmra.mxu1 %vm412_vm2, %v390_v48  ;;  %4765 = vst [vmem:[#allocation31_spill] sm:$0xff] %v3197_v22  ;;  %v400_v41 = vsel %vm42_vm1, %v240_v47, %v3197_v22  ;;  %v3231_v48 = vpop.trf.xlu1 }
 0x209   :  { %v3211_v32 = vpop.permute.xlu0 %326 }
 0x20a   :  { %2319 = vmatmul.msk.f32.gmra.mxu0 %vm412_vm2, %v391_v50  ;;  %2351 = vmatmul.msk.f32.gmra.mxu1 %vm412_vm2, %v391_v50  ;;  %4768 = vst [vmem:[#allocation34_spill] sm:$0xff] %v3211_v32 }
 0x211   :  { %v3229_v45 = vpop.permute.xlu0 %328 }
 0x212   :  { %2320 = vmatmul.msk.f32.gmra.mxu0 %vm412_vm2, %v392_v52  ;;  %2352 = vmatmul.msk.f32.gmra.mxu1 %vm412_vm2, %v392_v52  ;;  %4771 = vst [vmem:[#allocation37_spill] sm:$0xff] %v3229_v45  ;;  %v401_v52 = vsel %vm42_vm1, %v241_v49, %v3211_v32 }
 0x21a   :  { %2321 = vmatmul.msk.f32.gmra.mxu0 %vm412_vm2, %v393_v56  ;;  %2353 = vmatmul.msk.f32.gmra.mxu1 %vm412_vm2, %v393_v56 }
 0x222   :  { %2322 = vmatmul.msk.f32.gmra.mxu0 %vm412_vm2, %v394_v62  ;;  %2354 = vmatmul.msk.f32.gmra.mxu1 %vm412_vm2, %v394_v62 }
 0x22a   :  { %2323 = vmatmul.msk.f32.gmra.mxu0 %vm412_vm2, %v395_v4  ;;  %2355 = vmatmul.msk.f32.gmra.mxu1 %vm412_vm2, %v395_v4  ;;  %v402_v4 = vsel %vm42_vm1, %v242_v53, %v3229_v45 }
 0x232   :  { %2324 = vmatmul.msk.f32.gmra.mxu0 %vm412_vm2, %v396_v13  ;;  %2356 = vmatmul.msk.f32.gmra.mxu1 %vm412_vm2, %v396_v13  ;;  %v3247_v13 = vpop.permute.xlu0 %330 }
 0x233   :  { %4772 = vst [vmem:[#allocation38_spill] sm:$0xff] %v3247_v13  ;;  %v403_v53 = vsel %vm42_vm1, %v3159_v57, %v3247_v13 }
 0x23a   :  { %2325 = vmatmul.msk.f32.gmra.mxu0 %vm412_vm2, %v397_v16  ;;  %2357 = vmatmul.msk.f32.gmra.mxu1 %vm412_vm2, %v397_v16  ;;  %v3249_v16 = vpop.trf.xlu1 }
 0x242   :  { %2326 = vmatmul.msk.f32.gmra.mxu0 %vm412_vm2, %v398_v20  ;;  %2358 = vmatmul.msk.f32.gmra.mxu1 %vm412_vm2, %v398_v20 }
 0x247   :  { %v3201_v26 = vpop.f32.mrf.mxu0  ;;  %v3203_v29 = vpop.f32.mrf.mxu1 }
 0x248   :  { %4766 = vst [vmem:[#allocation32_spill] sm:$0xff] %v3201_v26  ;;  %v744_v30 = vmax.f32 %v3201_v26, %v3203_v29 }
 0x249   :  { %4767 = vst [vmem:[#allocation33_spill] sm:$0xff] %v3203_v29 }
 0x24a   :  { %2327 = vmatmul.msk.f32.gmra.mxu0 %vm412_vm2, %v399_v31  ;;  %2359 = vmatmul.msk.f32.gmra.mxu1 %vm412_vm2, %v399_v31  ;;  %v3264_v31 = vpop.permute.xlu0 %332 }
 0x24b   :  { %745 = vmax.xlane.f32.xlu2 %v744_v30  ;;  %4773 = vst [vmem:[#allocation39_spill] sm:$0xff] %v3264_v31 }
 0x24f   :  { %v3215_v37 = vpop.f32.mrf.mxu0  ;;  %v3217_v38 = vpop.f32.mrf.mxu1 }
 0x250   :  { %v747_v40 = vmax.f32 %v3215_v37, %v3217_v38 }
 0x252   :  { %2328 = vmatmul.msk.f32.gmra.mxu0 %vm412_vm2, %v400_v41  ;;  %2360 = vmatmul.msk.f32.gmra.mxu1 %vm412_vm2, %v400_v41  ;;  %v3277_v57 = vpop.permute.xlu0 %336 }
 0x253   :  { %748 = vmax.xlane.f32.xlu2 %v747_v40  ;;  %v251_v40 = vpop.trf.xlu1  ;;  %4776 = vst [vmem:[#allocation42_spill] sm:$0xff] %v3277_v57  ;;  %v406_v13 = vsel %vm42_vm1, %v3189_v19, %v3277_v57 }
 0x257   :  { %v3225_v43 = vpop.f32.mrf.mxu0  ;;  %v3227_v44 = vpop.f32.mrf.mxu1 }
 0x258   :  { %4769 = vst [vmem:[#allocation35_spill] sm:$0xff] %v3225_v43  ;;  %v750_v50 = vmax.f32 %v3225_v43, %v3227_v44 }
 0x259   :  { %4770 = vst [vmem:[#allocation36_spill] sm:$0xff] %v3227_v44 }
 0x25a   :  { %2329 = vmatmul.msk.f32.gmra.mxu0 %vm412_vm2, %v401_v52  ;;  %2361 = vmatmul.msk.f32.gmra.mxu1 %vm412_vm2, %v401_v52 }
 0x25b   :  { %751 = vmax.xlane.f32.xlu2 %v750_v50 }
 0x25f   :  { %v3239_v47 = vpop.f32.mrf.mxu0  ;;  %v3241_v56 = vpop.f32.mrf.mxu1 }
 0x260   :  { %v753_v62 = vmax.f32 %v3239_v47, %v3241_v56 }
 0x262   :  { %2330 = vmatmul.msk.f32.gmra.mxu0 %vm412_vm2, %v402_v4  ;;  %2362 = vmatmul.msk.f32.gmra.mxu1 %vm412_vm2, %v402_v4  ;;  %v3279_v4 = vpop.permute.xlu1 %334 }
 0x263   :  { %754 = vmax.xlane.f32.xlu2 %v753_v62  ;;  %v404_v62 = vsel %vm42_vm1, %v3168_v1, %v3264_v31  ;;  %4777 = vst [vmem:[#allocation43_spill] sm:$0xff] %v3279_v4  ;;  %v405_v1 = vsel %vm42_vm1, %v3179_v9, %v3279_v4 }
 0x267   :  { %v3253_v49 = vpop.f32.mrf.mxu0  ;;  %v3255_v20 = vpop.f32.mrf.mxu1 }
 0x268   :  { %v756_v30 = vmax.f32 %v3253_v49, %v3255_v20 }
 0x26a   :  { %2331 = vmatmul.msk.f32.gmra.mxu0 %vm412_vm2, %v403_v53  ;;  %2363 = vmatmul.msk.f32.gmra.mxu1 %vm412_vm2, %v403_v53 }
 0x26b   :  { %757 = vmax.xlane.f32.xlu2 %v756_v30 }
 0x26f   :  { %v3266_v41 = vpop.f32.mrf.mxu0  ;;  %v3268_v50 = vpop.f32.mrf.mxu1 }
 0x270   :  { %4774 = vst [vmem:[#allocation40_spill] sm:$0xff] %v3266_v41  ;;  %v759_v52 = vmax.f32 %v3266_v41, %v3268_v50 }
 0x271   :  { %4775 = vst [vmem:[#allocation41_spill] sm:$0xff] %v3268_v50 }
 0x272   :  { %2332 = vmatmul.msk.f32.gmra.mxu0 %vm412_vm2, %v404_v62  ;;  %2364 = vmatmul.msk.f32.gmra.mxu1 %vm412_vm2, %v404_v62 }
 0x273   :  { %760 = vmax.xlane.f32.xlu2 %v759_v52  ;;  %v3292_v52 = vpop.permute.xlu0 %338 }
 0x274   :  { %4778 = vst [vmem:[#allocation44_spill] sm:$0xff] %v3292_v52  ;;  %v407_v45 = vsel %vm42_vm1, %v3199_v25, %v3292_v52 }
 0x277   :  { %v3281_v30 = vpop.f32.mrf.mxu0  ;;  %v3283_v53 = vpop.f32.mrf.mxu1 }
 0x278   :  { %v762_v0 = vmax.f32 %v3281_v30, %v3283_v53 }
 0x27a   :  { %2333 = vmatmul.msk.f32.gmra.mxu0 %vm412_vm2, %v405_v1  ;;  %2365 = vmatmul.msk.f32.gmra.mxu1 %vm412_vm2, %v405_v1 }
 0x27b   :  { %763 = vmax.xlane.f32.xlu2 %v762_v0  ;;  %v3309_v1 = vpop.permute.xlu0 %340 }
 0x27c   :  { %4779 = vst [vmem:[#allocation45_spill] sm:$0xff] %v3309_v1  ;;  %v408_v57 = vsel %vm42_vm1, %v3213_v34, %v3309_v1 }
 0x27f   :  { %v3294_v62 = vpop.f32.mrf.mxu0  ;;  %v3296_v63 = vpop.f32.mrf.mxu1 }
 0x280   :  { %v765_v31 = vmax.f32 %v3294_v62, %v3296_v63 }
 0x282   :  { %2334 = vmatmul.msk.f32.gmra.mxu0 %vm412_vm2, %v406_v13  ;;  %2366 = vmatmul.msk.f32.gmra.mxu1 %vm412_vm2, %v406_v13 }
 0x283   :  { %766 = vmax.xlane.f32.xlu0 %v765_v31  ;;  %v3327_v32 = vpop.permute.xlu0 %342 }
 0x284   :  { %4780 = vst [vmem:[#allocation46_spill] sm:$0xff] %v3327_v32  ;;  %v409_v52 = vsel %vm42_vm1, %v3231_v48, %v3327_v32 }
 0x287   :  { %v3305_v9 = vpop.f32.mrf.mxu0  ;;  %v3307_v0 = vpop.f32.mrf.mxu1 }
 0x288   :  { %v768_v4 = vmax.f32 %v3305_v9, %v3307_v0 }
 0x28a   :  { %2335 = vmatmul.msk.f32.gmra.mxu0 %vm412_vm2, %v407_v45  ;;  %2367 = vmatmul.msk.f32.gmra.mxu1 %vm412_vm2, %v407_v45 }
 0x28b   :  { %769 = vmax.xlane.f32.xlu0 %v768_v4  ;;  %v3342_v34 = vpop.permute.xlu0 %344 }
 0x28c   :  { %4781 = vst [vmem:[#allocation47_spill] sm:$0xff] %v3342_v34  ;;  %v410_v22 = vsel %vm42_vm1, %v3249_v16, %v3342_v34 }
 0x28f   :  { %v3318_v19 = vpop.f32.mrf.mxu0  ;;  %v3320_v13 = vpop.f32.mrf.mxu1 }
 0x290   :  { %v771_v31 = vmax.f32 %v3318_v19, %v3320_v13 }
 0x292   :  { %2336 = vmatmul.msk.f32.gmra.mxu0 %vm412_vm2, %v408_v57  ;;  %2368 = vmatmul.msk.f32.gmra.mxu1 %vm412_vm2, %v408_v57 }
 0x293   :  { %772 = vmax.xlane.f32.xlu0 %v771_v31  ;;  %v3355_v48 = vpop.permute.xlu0 %346 }
 0x294   :  { %4782 = vst [vmem:[#allocation48_spill] sm:$0xff] %v3355_v48  ;;  %v411_v17 = vsel %vm42_vm1, %v251_v40, %v3355_v48 }
 0x297   :  { %v3331_v25 = vpop.f32.mrf.mxu0  ;;  %v3333_v45 = vpop.f32.mrf.mxu1 }
 0x298   :  { %v774_v4 = vmax.f32 %v3331_v25, %v3333_v45 }
 0x29a   :  { %2337 = vmatmul.msk.f32.gmra.mxu0 %vm412_vm2, %v409_v52  ;;  %2369 = vmatmul.msk.f32.gmra.mxu1 %vm412_vm2, %v409_v52 }
 0x29b   :  { %775 = vmax.xlane.f32.xlu0 %v774_v4 }
 0x29f   :  { %v3344_v57 = vpop.f32.mrf.mxu0  ;;  %v3346_v31 = vpop.f32.mrf.mxu1 }
 0x2a0   :  { %v777_v1 = vmax.f32 %v3344_v57, %v3346_v31 }
 0x2a2   :  { %2338 = vmatmul.msk.f32.gmra.mxu0 %vm412_vm2, %v410_v22  ;;  %2370 = vmatmul.msk.f32.gmra.mxu1 %vm412_vm2, %v410_v22 }
 0x2a3   :  { %778 = vmax.xlane.f32.xlu0 %v777_v1  ;;  %v3371_v1 = vpop.xlane.xlu2 %742 }
 0x2a4   :  { %4783 = vst [vmem:[#allocation49_spill] sm:$0xff] %v3371_v1 }
 0x2a7   :  { %v3357_v52 = vpop.f32.mrf.mxu0  ;;  %v3359_v4 = vpop.f32.mrf.mxu1 }
 0x2a8   :  { %v780_v32 = vmax.f32 %v3357_v52, %v3359_v4 }
 0x2aa   :  { %2339 = vmatmul.msk.f32.gmra.mxu0 %vm412_vm2, %v411_v17  ;;  %2371 = vmatmul.msk.f32.gmra.mxu1 %vm412_vm2, %v411_v17 }
 0x2ab   :  { %781 = vmax.xlane.f32.xlu0 %v780_v32 }
 0x2af   :  { %v3367_v16 = vpop.f32.mrf.mxu0  ;;  %v3369_v22 = vpop.f32.mrf.mxu1 }
 0x2b7   :  { %v3373_v34 = vpop.f32.mrf.mxu0  ;;  %v3375_v8 = vpop.f32.mrf.mxu1 }
 0x2be   :  { %v3377_v27 = vpop.xlane.xlu2 %745 }
 0x2bf   :  { %4784 = vst [vmem:[#allocation50_spill] sm:$0xff] %v3377_v27  ;;  %v3379_v3 = vpop.f32.mrf.mxu0  ;;  %v3381_v40 = vpop.f32.mrf.mxu1 }
 0x2c6   :  { %v3383_v48 = vpop.xlane.xlu2 %748 }
 0x2c7   :  { %v3385_v17 = vpop.f32.mrf.mxu0  ;;  %v3387_v32 = vpop.f32.mrf.mxu1 }
 0x2ce   :  { %v3389_v23 = vpop.xlane.xlu2 %751 }
 0x2cf   :  { %4785 = vst [vmem:[#allocation51_spill] sm:$0xff] %v3389_v23  ;;  %v3391_v61 = vpop.f32.mrf.mxu0  ;;  %v3393_v18 = vpop.f32.mrf.mxu1 }
 0x2d0   :  { %4786 = vst [vmem:[#allocation52_spill] sm:$0xff] %v3391_v61  ;;  %v795_v51 = vmax.f32 %v3391_v61, %v3393_v18 }
 0x2d1   :  { %4787 = vst [vmem:[#allocation53_spill] sm:$0xff] %v3393_v18 }
 0x2d2   :  { %796 = vmax.xlane.f32.xlu1 %v795_v51 }
 0x2d6   :  { %v3397_v12 = vpop.xlane.xlu2 %754 }
 0x2d7   :  { %v3399_v46 = vpop.f32.mrf.mxu0  ;;  %v3401_v7 = vpop.f32.mrf.mxu1 }
 0x2d8   :  { %v798_v42 = vmax.f32 %v3399_v46, %v3401_v7 }
 0x2da   :  { %799 = vmax.xlane.f32.xlu0 %v798_v42 }
 0x2de   :  { %v3405_v2 = vpop.xlane.xlu2 %757 }
 0x2df   :  { %v3407_v35 = vpop.f32.mrf.mxu0  ;;  %v3409_v58 = vpop.f32.mrf.mxu1 }
 0x2e0   :  { %4788 = vst [vmem:[#allocation54_spill] sm:$0xff] %v3407_v35  ;;  %v801_v28 = vmax.f32 %v3407_v35, %v3409_v58 }
 0x2e1   :  { %4789 = vst [vmem:[#allocation55_spill] sm:$0xff] %v3409_v58 }
 0x2e2   :  { %802 = vmax.xlane.f32.xlu0 %v801_v28 }
 0x2e6   :  { %v3413_v51 = vpop.xlane.xlu2 %760 }
 0x2e7   :  { %v3415_v24 = vpop.f32.mrf.mxu0  ;;  %v3417_v39 = vpop.f32.mrf.mxu1 }
 0x2e8   :  { %4790 = vst [vmem:[#allocation56_spill] sm:$0xff] %v3415_v24  ;;  %v804_v36 = vmax.f32 %v3415_v24, %v3417_v39  ;;  %v792_v24 = vmax.f32 %v3385_v17, %v3387_v32 }
 0x2e9   :  { %4791 = vst [vmem:[#allocation57_spill] sm:$0xff] %v3417_v39 }
 0x2ea   :  { %805 = vmax.xlane.f32.xlu0 %v804_v36 }
 0x2ee   :  { %v764_v42 = vpop.xlane.xlu2 %763 }
 0x2ef   :  { %v849_v33 = vsub.f32 %v3281_v30, %v764_v42  ;;  %v850_v55 = vsub.f32 %v3283_v53, %v764_v42  ;;  %v3423_v54 = vpop.f32.mrf.mxu0  ;;  %v3425_v60 = vpop.f32.mrf.mxu1 }
 0x2f0   :  { %v807_v28 = vmax.f32 %v3423_v54, %v3425_v60 }
 0x2f1   :  { %v931_v59 = vmul.f32 1.442695, %v849_v33  ;;  %v933_v21 = vmul.f32 1.442695, %v850_v55 }
 0x2f2   :  { %808 = vmax.xlane.f32.xlu0 %v807_v28 }
 0x2f3   :  { %2441 = vpow2.f32 %v931_v59 }
 0x2f4   :  { %2443 = vpow2.f32 %v933_v21 }
 0x2f6   :  { %v3439_v14 = vpop.xlane.xlu0 %766 }
 0x2f7   :  { %v3429_v15 = vpop.f32.mrf.mxu0  ;;  %v3431_v36 = vpop.f32.mrf.mxu1 }
 0x2f8   :  { %4792 = vst [vmem:[#allocation58_spill] sm:$0xff] %v3429_v15  ;;  %v810_v30 = vmax.f32 %v3429_v15, %v3431_v36 }
 0x2f9   :  { %4793 = vst [vmem:[#allocation59_spill] sm:$0xff] %v3431_v36  ;;  %v3435_v53 = vpop.eup %2441 }
 0x2fa   :  { %4794 = vst [vmem:[#allocation60_spill] sm:$0xff] %v3435_v53  ;;  %v3437_v42 = vpop.eup %2443  ;;  %811 = vmax.xlane.f32.xlu0 %v810_v30 }
 0x2fb   :  { %4795 = vst [vmem:[#allocation61_spill] sm:$0xff] %v3437_v42  ;;  %v1050_v33 = vadd.f32 %v3437_v42, %v3435_v53 }
 0x2fd   :  { %1051 = vadd.xlane.f32.xlu1 %v1050_v33 }
 0x2fe   :  { %v3449_v28 = vpop.xlane.xlu0 %769 }
 0x2ff   :  { %v3443_v55 = vpop.f32.mrf.mxu0  ;;  %v3445_v21 = vpop.f32.mrf.mxu1 }
 0x300   :  { %v813_v59 = vmax.f32 %v3443_v55, %v3445_v21 }
 0x302   :  { %814 = vmax.xlane.f32.xlu0 %v813_v59 }
 0x306   :  { %v773_v42 = vpop.xlane.xlu0 %772 }
 0x307   :  { %v3451_v1 = vpop.f32.mrf.mxu0  ;;  %v3453_v58 = vpop.f32.mrf.mxu1 }
 0x308   :  { %v816_v30 = vmax.f32 %v3451_v1, %v3453_v58 }
 0x30a   :  { %817 = vmax.xlane.f32.xlu0 %v816_v30 }
 0x30e   :  { %v776_v44 = vpop.xlane.xlu0 %775 }
 0x30f   :  { %v3457_v33 = vpop.f32.mrf.mxu0  ;;  %v3459_v53 = vpop.f32.mrf.mxu1  ;;  %v858_v26 = vsub.f32 %v3333_v45, %v776_v44 }
 0x310   :  { %v819_v35 = vmax.f32 %v3457_v33, %v3459_v53 }
 0x311   :  { %v949_v50 = vmul.f32 1.442695, %v858_v26  ;;  %v856_v26 = vsub.f32 %v3320_v13, %v773_v42  ;;  %v854_v13 = vsub.f32 %v3307_v0, %v3449_v28 }
 0x312   :  { %820 = vmax.xlane.f32.xlu0 %v819_v35  ;;  %v857_v35 = vsub.f32 %v3331_v25, %v776_v44  ;;  %v738_v25 = vmax.f32 %v3047_v10, %v3049_v11 }
 0x314   :  { %v947_v39 = vmul.f32 1.442695, %v857_v35  ;;  %v851_v35 = vsub.f32 %v3294_v62, %v3439_v14 }
 0x316   :  { %v779_v29 = vpop.xlane.xlu0 %778  ;;  %2445 = vpow2.f32 %v947_v39  ;;  %v855_v39 = vsub.f32 %v3318_v19, %v773_v42  ;;  %v853_v19 = vsub.f32 %v3305_v9, %v3449_v28  ;;  %v935_v42 = vmul.f32 1.442695, %v851_v35 }
 0x317   :  { %v3463_v59 = vpop.f32.mrf.mxu0  ;;  %v3465_v18 = vpop.f32.mrf.mxu1  ;;  %v859_v27 = vsub.f32 %v3344_v57, %v779_v29  ;;  %v860_v36 = vsub.f32 %v3346_v31, %v779_v29  ;;  %2447 = vpow2.f32 %v949_v50  ;;  %v735_v29 = vmax.f32 %v3034_v5, %v3036_v6 }
 0x318   :  { %v822_v61 = vmax.f32 %v3463_v59, %v3465_v18  ;;  %v943_v31 = vmul.f32 1.442695, %v855_v39  ;;  %v939_v62 = vmul.f32 1.442695, %v853_v19 }
 0x319   :  { %v951_v41 = vmul.f32 1.442695, %v859_v27  ;;  %v953_v44 = vmul.f32 1.442695, %v860_v36  ;;  %v945_v36 = vmul.f32 1.442695, %v856_v26  ;;  %v783_v26 = vmax.f32 %v3367_v16, %v3369_v22 }
 0x31a   :  { %823 = vmax.xlane.f32.xlu0 %v822_v61 }
 0x31b   :  { %2449 = vpow2.f32 %v951_v41 }
 0x31c   :  { %2451 = vpow2.f32 %v953_v44  ;;  %v3491_v45 = vpop.eup %2445  ;;  %v786_v44 = vmax.f32 %v3373_v34, %v3375_v8 }
 0x31d   :  { %v3493_v57 = vpop.eup %2447  ;;  %2453 = vpow2.f32 %v943_v31 }
 0x31e   :  { %v1062_v41 = vadd.f32 %v3493_v57, %v3491_v45  ;;  %2455 = vpow2.f32 %v945_v36 }
 0x31f   :  { %v3469_v43 = vpop.f32.mrf.mxu0  ;;  %v3471_v30 = vpop.f32.mrf.mxu1  ;;  %2457 = vpow2.f32 %v935_v42 }
 0x320   :  { %v825_v23 = vmax.f32 %v3469_v43, %v3471_v30 }
 0x321   :  { %v3495_v27 = vpop.eup %2449 }
 0x322   :  { %826 = vmax.xlane.f32.xlu0 %v825_v23 }
 0x327   :  { %v3479_v15 = vpop.f32.mrf.mxu0  ;;  %v3481_v61 = vpop.f32.mrf.mxu1 }
 0x328   :  { %v828_v23 = vmax.f32 %v3479_v15, %v3481_v61 }
 0x32a   :  { %793 = vmax.xlane.f32.xlu0 %v792_v24  ;;  %829 = vmax.xlane.f32.xlu2 %v828_v23  ;;  %v3497_v24 = vpop.eup %2451  ;;  %v852_v23 = vsub.f32 %v3296_v63, %v3439_v14  ;;  %v941_v63 = vmul.f32 1.442695, %v854_v13  ;;  %v782_v14 = vpop.xlane.xlu0 %781 }
 0x32b   :  { %v1065_v50 = vadd.f32 %v3497_v24, %v3495_v27  ;;  %v3517_v39 = vpop.eup %2453  ;;  %v861_v0 = vsub.f32 %v3357_v52, %v782_v14  ;;  %v862_v28 = vsub.f32 %v3359_v4, %v782_v14 }
 0x32c   :  { %v3519_v9 = vpop.eup %2455 }
 0x32d   :  { %v955_v31 = vmul.f32 1.442695, %v861_v0  ;;  %v957_v35 = vmul.f32 1.442695, %v862_v28 }
 0x332   :  { %736 = vmax.xlane.f32.xlu0 %v735_v29  ;;  %739 = vmax.xlane.f32.xlu2 %v738_v25  ;;  %v789_v29 = vmax.f32 %v3379_v3, %v3381_v40  ;;  %v937_v25 = vmul.f32 1.442695, %v852_v23 }
 0x334   :  { %2459 = vpow2.f32 %v937_v25 }
 0x335   :  { %2461 = vpow2.f32 %v939_v62 }
 0x336   :  { %2463 = vpow2.f32 %v941_v63 }
 0x337   :  { %2465 = vpow2.f32 %v955_v31  ;;  %v845_v31 = vsub.f32 %v3253_v49, %v3405_v2 }
 0x338   :  { %2467 = vpow2.f32 %v957_v35 }
 0x33a   :  { %1063 = vadd.xlane.f32.xlu0 %v1062_v41  ;;  %1066 = vadd.xlane.f32.xlu2 %v1065_v50  ;;  %v1059_v41 = vadd.f32 %v3519_v9, %v3517_v39  ;;  %v3527_v50 = vpop.eup %2457 }
 0x33b   :  { %4796 = vst [vmem:[#allocation62_spill] sm:$0xff] %v3527_v50  ;;  %v3529_v36 = vpop.eup %2459 }
 0x33c   :  { %4797 = vst [vmem:[#allocation63_spill] sm:$0xff] %v3529_v36  ;;  %v3531_v23 = vpop.eup %2461  ;;  %v1053_v4 = vadd.f32 %v3529_v36, %v3527_v50 }
 0x33d   :  { %4798 = vst [vmem:[#allocation64_spill] sm:$0xff] %v3531_v23  ;;  %v3533_v52 = vpop.eup %2463 }
 0x33e   :  { %4799 = vst [vmem:[#allocation65_spill] sm:$0xff] %v3533_v52  ;;  %v1056_v13 = vadd.f32 %v3533_v52, %v3531_v23  ;;  %v3541_v42 = vpop.eup %2465 }
 0x342   :  { %787 = vmax.xlane.f32.xlu0 %v786_v44  ;;  %790 = vmax.xlane.f32.xlu2 %v789_v29  ;;  %v3543_v44 = vpop.eup %2467 }
 0x343   :  { %v1068_v25 = vadd.f32 %v3543_v44, %v3541_v42 }
 0x34a   :  { %784 = vmax.xlane.f32.xlu0 %v783_v26  ;;  %1060 = vadd.xlane.f32.xlu2 %v1059_v41 }
 0x34d   :  { %v3535_v19 = vpop.xlane.xlu0 %799 }
 0x352   :  { %1054 = vadd.xlane.f32.xlu0 %v1053_v4  ;;  %1057 = vadd.xlane.f32.xlu2 %v1056_v13  ;;  %v846_v13 = vsub.f32 %v3255_v20, %v3405_v2 }
 0x354   :  { %v925_v36 = vmul.f32 1.442695, %v846_v13 }
 0x355   :  { %v3545_v29 = vpop.xlane.xlu0 %802 }
 0x35a   :  { %1069 = vadd.xlane.f32.xlu0 %v1068_v25  ;;  %v923_v25 = vmul.f32 1.442695, %v845_v31 }
 0x35d   :  { %v3549_v62 = vpop.xlane.xlu0 %805 }
 0x365   :  { %v809_v63 = vpop.xlane.xlu0 %808 }
 0x366   :  { %v880_v2 = vsub.f32 %v3425_v60, %v809_v63  ;;  %v839_v60 = vsub.f32 %v3215_v37, %v3383_v48 }
 0x368   :  { %v911_v13 = vmul.f32 1.442695, %v839_v60 }
 0x36d   :  { %v3551_v14 = vpop.xlane.xlu0 %811 }
 0x375   :  { %v3553_v0 = vpop.xlane.xlu0 %814 }
 0x37d   :  { %v818_v28 = vpop.xlane.xlu0 %817 }
 0x37e   :  { %v885_v26 = vsub.f32 %v3451_v1, %v818_v28  ;;  %v886_v41 = vsub.f32 %v3453_v58, %v818_v28  ;;  %v879_v58 = vsub.f32 %v3423_v54, %v809_v63 }
 0x380   :  { %v1003_v35 = vmul.f32 1.442695, %v885_v26  ;;  %v1005_v4 = vmul.f32 1.442695, %v886_v41 }
 0x382   :  { %2469 = vpow2.f32 %v1003_v35 }
 0x383   :  { %2471 = vpow2.f32 %v1005_v4  ;;  %v840_v4 = vsub.f32 %v3217_v38, %v3383_v48 }
 0x384   :  { %2473 = vpow2.f32 %v923_v25 }
 0x385   :  { %v821_v50 = vpop.xlane.xlu0 %820  ;;  %2475 = vpow2.f32 %v925_v36  ;;  %v913_v37 = vmul.f32 1.442695, %v840_v4 }
 0x386   :  { %v887_v52 = vsub.f32 %v3457_v33, %v821_v50  ;;  %v888_v23 = vsub.f32 %v3459_v53, %v821_v50  ;;  %v991_v33 = vmul.f32 1.442695, %v879_v58  ;;  %v993_v53 = vmul.f32 1.442695, %v880_v2 }
 0x387   :  { %v874_v2 = vsub.f32 %v3401_v7, %v3535_v19 }
 0x388   :  { %v3563_v1 = vpop.eup %2469  ;;  %v1007_v49 = vmul.f32 1.442695, %v887_v52  ;;  %v1009_v28 = vmul.f32 1.442695, %v888_v23 }
 0x389   :  { %v3566_v26 = vpop.eup %2471 }
 0x38a   :  { %2477 = vpow2.f32 %v1007_v49  ;;  %v1104_v20 = vadd.f32 %v3566_v26, %v3563_v1  ;;  %v3571_v41 = vpop.eup %2473  ;;  %v873_v49 = vsub.f32 %v3399_v46, %v3535_v19  ;;  %v884_v46 = vsub.f32 %v3445_v21, %v3553_v0 }
 0x38b   :  { %2479 = vpow2.f32 %v1009_v28  ;;  %v3575_v52 = vpop.eup %2475  ;;  %v981_v19 = vmul.f32 1.442695, %v874_v2 }
 0x38c   :  { %1105 = vadd.xlane.f32.xlu0 %v1104_v20  ;;  %2481 = vpow2.f32 %v991_v33  ;;  %v883_v33 = vsub.f32 %v3443_v55, %v3553_v0  ;;  %v1001_v55 = vmul.f32 1.442695, %v884_v46 }
 0x38d   :  { %v824_v50 = vpop.xlane.xlu0 %823  ;;  %2483 = vpow2.f32 %v993_v53 }
 0x38e   :  { %v889_v54 = vsub.f32 %v3463_v59, %v824_v50  ;;  %v890_v23 = vsub.f32 %v3465_v18, %v824_v50  ;;  %v1044_v59 = vadd.f32 %v3575_v52, %v3571_v41 }
 0x390   :  { %v3577_v36 = vpop.eup %2477  ;;  %v1011_v63 = vmul.f32 1.442695, %v889_v54  ;;  %v1013_v31 = vmul.f32 1.442695, %v890_v23  ;;  %v999_v23 = vmul.f32 1.442695, %v883_v33 }
 0x391   :  { %v3581_v35 = vpop.eup %2479 }
 0x392   :  { %2485 = vpow2.f32 %v1011_v63  ;;  %v1107_v18 = vadd.f32 %v3581_v35, %v3577_v36  ;;  %v3589_v58 = vpop.eup %2481 }
 0x393   :  { %2487 = vpow2.f32 %v1013_v31  ;;  %4800 = vst [vmem:[#allocation66_spill] sm:$0xff] %v3589_v58  ;;  %v3595_v28 = vpop.eup %2483 }
 0x394   :  { %1108 = vadd.xlane.f32.xlu2 %v1107_v18  ;;  %1045 = vadd.xlane.f32.xlu0 %v1044_v59  ;;  %4801 = vst [vmem:[#allocation67_spill] sm:$0xff] %v3595_v28  ;;  %2489 = vpow2.f32 %v911_v13  ;;  %v843_v59 = vsub.f32 %v3239_v47, %v3397_v12  ;;  %v4803_v47 = vld [vmem:[#allocation41_spill] sm:$0xff] }
 0x395   :  { %v827_v25 = vpop.xlane.xlu0 %826  ;;  %2491 = vpow2.f32 %v913_v37  ;;  %v848_v2 = vsub.f32 %v4803_v47, %v3413_v51 }
 0x396   :  { %v891_v38 = vsub.f32 %v3469_v43, %v827_v25  ;;  %v892_v48 = vsub.f32 %v3471_v30, %v827_v25  ;;  %v979_v43 = vmul.f32 1.442695, %v873_v49  ;;  %v1095_v30 = vadd.f32 %v3595_v28, %v3589_v58  ;;  %v4819_v28 = vld [vmem:[#allocation52_spill] sm:$0xff] }
 0x397   :  { %v844_v25 = vsub.f32 %v3241_v56, %v3397_v12 }
 0x398   :  { %v3599_v20 = vpop.eup %2485  ;;  %v1015_v53 = vmul.f32 1.442695, %v891_v38  ;;  %v1017_v50 = vmul.f32 1.442695, %v892_v48 }
 0x399   :  { %v3603_v54 = vpop.eup %2487  ;;  %v921_v56 = vmul.f32 1.442695, %v844_v25 }
 0x39a   :  { %2493 = vpow2.f32 %v1015_v53  ;;  %v1110_v7 = vadd.f32 %v3603_v54, %v3599_v20  ;;  %v3613_v31 = vpop.eup %2489  ;;  %v919_v53 = vmul.f32 1.442695, %v843_v59 }
 0x39b   :  { %2495 = vpow2.f32 %v1017_v50  ;;  %v3617_v4 = vpop.eup %2491 }
 0x39c   :  { %1096 = vadd.xlane.f32.xlu0 %v1095_v30  ;;  %1111 = vadd.xlane.f32.xlu1 %v1110_v7  ;;  %2497 = vpow2.f32 %v979_v43  ;;  %v1035_v38 = vadd.f32 %v3617_v4, %v3613_v31 }
 0x39d   :  { %v3611_v60 = vpop.xlane.xlu0 %793  ;;  %v830_v63 = vpop.xlane.xlu2 %829  ;;  %2499 = vpow2.f32 %v981_v19 }
 0x39e   :  { %v893_v21 = vsub.f32 %v3479_v15, %v830_v63  ;;  %v894_v0 = vsub.f32 %v3481_v61, %v830_v63  ;;  %2501 = vpow2.f32 %v999_v23  ;;  %v4802_v15 = vld [vmem:[#allocation40_spill] sm:$0xff]  ;;  %v929_v23 = vmul.f32 1.442695, %v848_v2 }
 0x39f   :  { %2503 = vpow2.f32 %v1001_v55  ;;  %v847_v61 = vsub.f32 %v4802_v15, %v3413_v51  ;;  %v4808_v55 = vld [vmem:[#allocation56_spill] sm:$0xff] }
 0x3a0   :  { %v3619_v18 = vpop.eup %2493  ;;  %v1019_v13 = vmul.f32 1.442695, %v893_v21  ;;  %v1021_v49 = vmul.f32 1.442695, %v894_v0  ;;  %v877_v63 = vsub.f32 %v4808_v55, %v3549_v62  ;;  %v4809_v0 = vld [vmem:[#allocation57_spill] sm:$0xff]  ;;  %v4813_v55 = vld [vmem:[#allocation32_spill] sm:$0xff] }
 0x3a1   :  { %v3623_v37 = vpop.eup %2495  ;;  %v927_v30 = vmul.f32 1.442695, %v847_v61  ;;  %v878_v59 = vsub.f32 %v4809_v0, %v3549_v62  ;;  %v4814_v0 = vld [vmem:[#allocation33_spill] sm:$0xff] }
 0x3a2   :  { %v1113_v48 = vadd.f32 %v3623_v37, %v3619_v18  ;;  %v3635_v33 = vpop.eup %2497  ;;  %2505 = vpow2.f32 %v1019_v13  ;;  %v987_v62 = vmul.f32 1.442695, %v877_v63 }
 0x3a3   :  { %4804 = vst [vmem:[#allocation40_spill] sm:$0xff] %v3635_v33  ;;  %v3637_v12 = vpop.eup %2499  ;;  %2507 = vpow2.f32 %v1021_v49  ;;  %v989_v2 = vmul.f32 1.442695, %v878_v59 }
 0x3a4   :  { %1036 = vadd.xlane.f32.xlu0 %v1035_v38  ;;  %1114 = vadd.xlane.f32.xlu1 %v1113_v48  ;;  %4805 = vst [vmem:[#allocation41_spill] sm:$0xff] %v3637_v12  ;;  %v3641_v43 = vpop.eup %2501  ;;  %2509 = vpow2.f32 %v919_v53  ;;  %v4811_v38 = vld [vmem:[#allocation59_spill] sm:$0xff] }
 0x3a5   :  { %v3639_v50 = vpop.xlane.xlu0 %736  ;;  %v740_v46 = vpop.xlane.xlu2 %739  ;;  %4806 = vst [vmem:[#allocation68_spill] sm:$0xff] %v3641_v43  ;;  %2511 = vpow2.f32 %v921_v56  ;;  %v882_v48 = vsub.f32 %v4811_v38, %v3551_v14 }
 0x3a6   :  { %v833_v7 = vsub.f32 %v3047_v10, %v740_v46  ;;  %v834_v51 = vsub.f32 %v3049_v11, %v740_v46  ;;  %v3645_v19 = vpop.eup %2503  ;;  %2513 = vpow2.f32 %v927_v30  ;;  %v4810_v10 = vld [vmem:[#allocation58_spill] sm:$0xff]  ;;  %v1086_v11 = vadd.f32 %v3637_v12, %v3635_v33 }
 0x3a7   :  { %4807 = vst [vmem:[#allocation69_spill] sm:$0xff] %v3645_v19  ;;  %v881_v49 = vsub.f32 %v4810_v10, %v3551_v14  ;;  %v1101_v15 = vadd.f32 %v3645_v19, %v3641_v43  ;;  %2515 = vpow2.f32 %v929_v23  ;;  %v997_v14 = vmul.f32 1.442695, %v882_v48  ;;  %v4812_v23 = vld [vmem:[#allocation50_spill] sm:$0xff]  ;;  %v4815_v10 = vld [vmem:[#allocation51_spill] sm:$0xff]  ;;  %v4817_v48 = vld [vmem:[#allocation36_spill] sm:$0xff] }
 0x3a8   :  { %v899_v21 = vmul.f32 1.442695, %v833_v7  ;;  %v901_v13 = vmul.f32 1.442695, %v834_v51  ;;  %v3651_v25 = vpop.eup %2505  ;;  %v837_v63 = vsub.f32 %v4813_v55, %v4812_v23  ;;  %v838_v59 = vsub.f32 %v4814_v0, %v4812_v23  ;;  %v797_v55 = vpop.xlane.xlu1 %796  ;;  %v4820_v43 = vld [vmem:[#allocation53_spill] sm:$0xff] }
 0x3a9   :  { %v3659_v61 = vpop.eup %2507  ;;  %v995_v30 = vmul.f32 1.442695, %v881_v49  ;;  %v4816_v49 = vld [vmem:[#allocation35_spill] sm:$0xff] }
 0x3aa   :  { %2517 = vpow2.f32 %v899_v21  ;;  %v1116_v47 = vadd.f32 %v3659_v61, %v3651_v25  ;;  %v3669_v46 = vpop.eup %2509  ;;  %v909_v0 = vmul.f32 1.442695, %v838_v59  ;;  %v871_v59 = vsub.f32 %v4819_v28, %v797_v55 }
 0x3ab   :  { %2519 = vpow2.f32 %v901_v13  ;;  %v3671_v7 = vpop.eup %2511 }
 0x3ac   :  { %1087 = vadd.xlane.f32.xlu0 %v1086_v11  ;;  %1102 = vadd.xlane.f32.xlu1 %v1101_v15  ;;  %v3673_v51 = vpop.eup %2513  ;;  %2521 = vpow2.f32 %v987_v62  ;;  %v841_v11 = vsub.f32 %v4816_v49, %v4815_v10  ;;  %v1041_v15 = vadd.f32 %v3671_v7, %v3669_v46  ;;  %v842_v62 = vsub.f32 %v4817_v48, %v4815_v10 }
 0x3ad   :  { %v3665_v53 = vpop.xlane.xlu0 %1063  ;;  %v3667_v56 = vpop.xlane.xlu2 %1066  ;;  %1117 = vadd.xlane.f32.xlu2 %v1116_v47  ;;  %2523 = vpow2.f32 %v989_v2  ;;  %v907_v47 = vmul.f32 1.442695, %v837_v63 }
 0x3ae   :  { %v3677_v21 = vpop.eup %2515  ;;  %2525 = vpow2.f32 %v995_v30  ;;  %v915_v33 = vmul.f32 1.442695, %v841_v11  ;;  %v917_v10 = vmul.f32 1.442695, %v842_v62  ;;  %v872_v11 = vsub.f32 %v4820_v43, %v797_v55 }
 0x3af   :  { %2527 = vpow2.f32 %v997_v14  ;;  %v1047_v2 = vadd.f32 %v3677_v21, %v3673_v51 }
 0x3b0   :  { %v3681_v13 = vpop.eup %2517  ;;  %2529 = vpow2.f32 %v907_v47 }
 0x3b1   :  { %v3687_v38 = vpop.eup %2519  ;;  %2531 = vpow2.f32 %v909_v0  ;;  %v977_v0 = vmul.f32 1.442695, %v872_v11 }
 0x3b2   :  { %v1026_v23 = vadd.f32 %v3687_v38, %v3681_v13  ;;  %v3697_v12 = vpop.eup %2521  ;;  %2533 = vpow2.f32 %v915_v33 }
 0x3b3   :  { %v3700_v63 = vpop.eup %2523  ;;  %2535 = vpow2.f32 %v917_v10 }
 0x3b4   :  { %1042 = vadd.xlane.f32.xlu1 %v1041_v15  ;;  %1027 = vadd.xlane.f32.xlu0 %v1026_v23  ;;  %4818 = vst [vmem:[#allocation56_spill] sm:$0xff] %v3700_v63  ;;  %v3703_v48 = vpop.eup %2525  ;;  %v1092_v62 = vadd.f32 %v3700_v63, %v3697_v12 }
 0x3b5   :  { %v3695_v30 = vpop.xlane.xlu0 %787  ;;  %v791_v49 = vpop.xlane.xlu2 %790  ;;  %1048 = vadd.xlane.f32.xlu2 %v1047_v2 }
 0x3b6   :  { %v867_v14 = vsub.f32 %v3379_v3, %v791_v49  ;;  %v868_v15 = vsub.f32 %v3381_v40, %v791_v49  ;;  %v3706_v19 = vpop.eup %2527  ;;  %v4821_v3 = vld [vmem:[#allocation54_spill] sm:$0xff]  ;;  %v4822_v40 = vld [vmem:[#allocation55_spill] sm:$0xff]  ;;  %v975_v49 = vmul.f32 1.442695, %v871_v59  ;;  %v832_v59 = vsub.f32 %v3036_v6, %v3639_v50 }
 0x3b7   :  { %v875_v23 = vsub.f32 %v4821_v3, %v3545_v29  ;;  %v876_v47 = vsub.f32 %v4822_v40, %v3545_v29  ;;  %v1098_v28 = vadd.f32 %v3706_v19, %v3703_v48  ;;  %v3717_v33 = vpop.eup %2529  ;;  %v831_v29 = vsub.f32 %v3034_v5, %v3639_v50  ;;  %v4824_v3 = vld [vmem:[#allocation16_spill] sm:$0xff] }
 0x3b8   :  { %v967_v58 = vmul.f32 1.442695, %v867_v14  ;;  %v969_v2 = vmul.f32 1.442695, %v868_v15  ;;  %v3719_v14 = vpop.eup %2531 }
 0x3b9   :  { %v983_v55 = vmul.f32 1.442695, %v875_v23  ;;  %v985_v15 = vmul.f32 1.442695, %v876_v47  ;;  %v3721_v10 = vpop.eup %2533  ;;  %v4825_v47 = vld [vmem:[#allocation17_spill] sm:$0xff] }
 0x3ba   :  { %2537 = vpow2.f32 %v967_v58  ;;  %v3725_v58 = vpop.eup %2535 }
 0x3bb   :  { %2539 = vpow2.f32 %v969_v2  ;;  %v4823_v2 = vld [vmem:[#allocation49_spill] sm:$0xff]  ;;  %v1038_v6 = vadd.f32 %v3725_v58, %v3721_v10 }
 0x3bc   :  { %1093 = vadd.xlane.f32.xlu1 %v1092_v62  ;;  %2541 = vpow2.f32 %v975_v49  ;;  %v835_v23 = vsub.f32 %v4824_v3, %v4823_v2  ;;  %v1032_v62 = vadd.f32 %v3719_v14, %v3717_v33  ;;  %v836_v5 = vsub.f32 %v4825_v47, %v4823_v2 }
 0x3bd   :  { %v785_v43 = vpop.xlane.xlu0 %784  ;;  %1099 = vadd.xlane.f32.xlu2 %v1098_v28  ;;  %2543 = vpow2.f32 %v977_v0  ;;  %v895_v49 = vmul.f32 1.442695, %v831_v29  ;;  %v897_v28 = vmul.f32 1.442695, %v832_v59  ;;  %v869_v47 = vsub.f32 %v3385_v17, %v3611_v60 }
 0x3be   :  { %2545 = vpow2.f32 %v983_v55  ;;  %v903_v3 = vmul.f32 1.442695, %v835_v23  ;;  %v905_v2 = vmul.f32 1.442695, %v836_v5  ;;  %v863_v29 = vsub.f32 %v3367_v16, %v785_v43 }
 0x3bf   :  { %2547 = vpow2.f32 %v985_v15  ;;  %v864_v59 = vsub.f32 %v3369_v22, %v785_v43  ;;  %v870_v5 = vsub.f32 %v3387_v32, %v3611_v60  ;;  %v971_v22 = vmul.f32 1.442695, %v869_v47 }
 0x3c0   :  { %v3729_v11 = vpop.eup %2537  ;;  %2549 = vpow2.f32 %v895_v49  ;;  %v865_v60 = vsub.f32 %v3373_v34, %v3695_v30 }
 0x3c1   :  { %v3735_v40 = vpop.eup %2539  ;;  %2551 = vpow2.f32 %v897_v28  ;;  %v961_v49 = vmul.f32 1.442695, %v864_v59  ;;  %v973_v43 = vmul.f32 1.442695, %v870_v5  ;;  %v866_v59 = vsub.f32 %v3375_v8, %v3695_v30  ;;  %v22_v8 = vld [vmem:[%s4634_s2 + $0x8] sm:$0xf] }
 0x3c2   :  { %v1077_v50 = vadd.f32 %v3735_v40, %v3729_v11  ;;  %v3745_v55 = vpop.eup %2541  ;;  %2553 = vpow2.f32 %v903_v3  ;;  %v1061_v3 = vpop.xlane.xlu2 %1060 }
 0x3c3   :  { %v3747_v63 = vpop.eup %2543  ;;  %2555 = vpow2.f32 %v905_v2 }
 0x3c4   :  { %1033 = vadd.xlane.f32.xlu1 %v1032_v62  ;;  %1078 = vadd.xlane.f32.xlu0 %v1077_v50  ;;  %v3749_v15 = vpop.eup %2545  ;;  %v1083_v23 = vadd.f32 %v3747_v63, %v3745_v55 }
 0x3c5   :  { %v3743_v0 = vpop.xlane.xlu0 %1054  ;;  %1039 = vadd.xlane.f32.xlu2 %v1038_v6  ;;  %v3752_v62 = vpop.eup %2547  ;;  %v959_v6 = vmul.f32 1.442695, %v863_v29 }
 0x3c6   :  { %v1089_v16 = vadd.f32 %v3752_v62, %v3749_v15  ;;  %v3763_v28 = vpop.eup %2549 }
 0x3c7   :  { %v3765_v17 = vpop.eup %2551 }
 0x3c8   :  { %v3768_v2 = vpop.eup %2553  ;;  %v1023_v29 = vadd.f32 %v3765_v17, %v3763_v28 }
 0x3c9   :  { %v3770_v32 = vpop.eup %2555 }
 0x3cc   :  { %1084 = vadd.xlane.f32.xlu1 %v1083_v23 }
 0x3cd   :  { %v1070_v50 = vpop.xlane.xlu0 %1069  ;;  %1090 = vadd.xlane.f32.xlu2 %v1089_v16  ;;  %v963_v16 = vmul.f32 1.442695, %v865_v60 }
 0x3ce   :  { %2557 = vrcp.f32 %v1070_v50 }
 0x3cf   :  { %2559 = vrcp.f32 %v3667_v56  ;;  %v1029_v56 = vadd.f32 %v3770_v32, %v3768_v2 }
 0x3d0   :  { %2561 = vpow2.f32 %v959_v6 }
 0x3d1   :  { %2563 = vpow2.f32 %v961_v49 }
 0x3d2   :  { %2565 = vpow2.f32 %v971_v22 }
 0x3d3   :  { %2567 = vpow2.f32 %v973_v43 }
 0x3d4   :  { %v2558_v47 = vpop.eup %2557  ;;  %2569 = vrcp.f32 %v3665_v53  ;;  %1024 = vadd.xlane.f32.xlu1 %v1023_v29  ;;  %v965_v53 = vmul.f32 1.442695, %v866_v59 }
 0x3d5   :  { %v2560_v23 = vpop.eup %2559  ;;  %v1181_v5 = vmul.f32 %v2558_v47, %v3541_v42  ;;  %v1182_v6 = vmul.f32 %v2558_v47, %v3543_v44  ;;  %1030 = vadd.xlane.f32.xlu2 %v1029_v56  ;;  %2571 = vrcp.f32 %v1061_v3  ;;  %v1058_v42 = vpop.xlane.xlu2 %1057 }
 0x3d6   :  { %v3783_v34 = vpop.eup %2561  ;;  %v1179_v44 = vmul.f32 %v2560_v23, %v3495_v27  ;;  %v1180_v22 = vmul.f32 %v2560_v23, %v3497_v24  ;;  %2573 = vpow2.f32 %v963_v16  ;;  %v1052_v56 = vpop.xlane.xlu1 %1051 }
 0x3d7   :  { %v3785_v49 = vpop.eup %2563  ;;  %1215 = vmatpush.xpose.msra.mxu2 %v1181_v5  ;;  %1235 = vmatpush.xpose.msra.mxu3 %v1182_v6  ;;  %2575 = vpow2.f32 %v965_v53 }
 0x3d8   :  { %v3790_v30 = vpop.eup %2565  ;;  %30 = vperm.xlu0 %2440, %v22_v8   ;;  %v1071_v60 = vadd.f32 %v3785_v49, %v3783_v34  ;;  %2577 = vrcp.f32 %v1058_v42  ;;  %v4827_v8 = vld [vmem:[#allocation65_spill] sm:$0xff] }
 0x3d9   :  { %v3792_v50 = vpop.eup %2567  ;;  %2579 = vrcp.f32 %v3743_v0  ;;  %v4828_v0 = vld [vmem:[#allocation62_spill] sm:$0xff] }
 0x3da   :  { %v2570_v43 = vpop.eup %2569  ;;  %v1080_v3 = vadd.f32 %v3792_v50, %v3790_v30  ;;  %2581 = vrcp.f32 %v1052_v56 }
 0x3db   :  { %1216 = vmatpush.xpose.msra.mxu2 %v1179_v44  ;;  %1236 = vmatpush.xpose.msra.mxu3 %v1180_v22  ;;  %v1177_v29 = vmul.f32 %v2570_v43, %v3491_v45  ;;  %v1178_v27 = vmul.f32 %v2570_v43, %v3493_v57  ;;  %v2572_v59 = vpop.eup %2571  ;;  %v4826_v57 = vld [vmem:[#allocation64_spill] sm:$0xff] }
 0x3dc   :  { %1072 = vadd.xlane.f32.xlu1 %v1071_v60  ;;  %v3802_v24 = vpop.eup %2573  ;;  %v1175_v23 = vmul.f32 %v2572_v59, %v3517_v39  ;;  %v1176_v5 = vmul.f32 %v2572_v59, %v3519_v9  ;;  %v4829_v39 = vld [vmem:[#allocation63_spill] sm:$0xff]  ;;  %v4830_v43 = vld [vmem:[#allocation60_spill] sm:$0xff]  ;;  %v4833_v59 = vld [vmem:[#allocation9_spill] sm:$0xff] }
 0x3dd   :  { %1081 = vadd.xlane.f32.xlu2 %v1080_v3  ;;  %v3805_v47 = vpop.eup %2575  ;;  %v4831_v3 = vld [vmem:[#allocation61_spill] sm:$0xff] }
 0x3de   :  { %v2578_v6 = vpop.eup %2577  ;;  %v1074_v45 = vadd.f32 %v3805_v47, %v3802_v24 }
 0x3df   :  { %1217 = vmatpush.xpose.msra.mxu2 %v1177_v29  ;;  %1237 = vmatpush.xpose.msra.mxu3 %v1178_v27  ;;  %v1173_v16 = vmul.f32 %v2578_v6, %v4826_v57  ;;  %v1174_v53 = vmul.f32 %v2578_v6, %v4827_v8  ;;  %v2580_v42 = vpop.eup %2579  ;;  %v4832_v27 = vld [vmem:[#allocation2_spill] sm:$0xff] }
 0x3e0   :  { %v1171_v44 = vmul.f32 %v2580_v42, %v4828_v0  ;;  %v1172_v22 = vmul.f32 %v2580_v42, %v4829_v39  ;;  %v2582_v9 = vpop.eup %2581  ;;  %v3819_v56 = vadd.f32 %v4833_v59, %v4832_v27  ;;  %v4835_v6 = vld [vmem:[#allocation10_spill] sm:$0xff] }
 0x3e1   :  { %v1169_v60 = vmul.f32 %v2582_v9, %v4830_v43  ;;  %v1170_v29 = vmul.f32 %v2582_v9, %v4831_v3 }
 0x3e2   :  { %4834 = vst [vmem:[#allocation57_spill] sm:$0xff] %v3819_v56 }
 0x3e3   :  { %1218 = vmatpush.xpose.msra.mxu2 %v1175_v23  ;;  %1238 = vmatpush.xpose.msra.mxu3 %v1176_v5  ;;  %v1303_v23 = vrot.slane %v3819_v56, 4 }
 0x3e5   :  { %1075 = vadd.xlane.f32.xlu2 %v1074_v45  ;;  %v3826_v45 = vadd.f32 %v4835_v6, %v4832_v27 }
 0x3e7   :  { %1219 = vmatpush.xpose.msra.mxu2 %v1173_v16  ;;  %1239 = vmatpush.xpose.msra.mxu3 %v1174_v53  ;;  %4836 = vst [vmem:[#allocation58_spill] sm:$0xff] %v3826_v45  ;;  %v1304_v57 = vrot.slane %v3826_v45, 4 }
 0x3eb   :  { %1220 = vmatpush.xpose.msra.mxu2 %v1171_v44  ;;  %1240 = vmatpush.xpose.msra.mxu3 %v1172_v22 }
 0x3ef   :  { %1221 = vmatpush.xpose.msra.mxu2 %v1169_v60  ;;  %1241 = vmatpush.xpose.msra.mxu3 %v1170_v29 }
 0x3ff   :  { %v3829_v16 = vpop.xlane.xlu0 %1105 }
 0x407   :  { %v3833_v53 = vpop.xlane.xlu2 %1108  ;;  %v1046_v0 = vpop.xlane.xlu0 %1045 }
 0x40e   :  { %1307 = vxpose.xlu2.b32.start.end [1/1] (short) %v1303_v23, 128 }
 0x40f   :  { %v3822_v5 = vpop.xlane.xlu1 %1111  ;;  %v3837_v9 = vpop.xlane.xlu0 %1096 }
 0x416   :  { %1339 = vxpose.xlu1.b32.start.end [1/1] (short) %v1304_v57, 128 }
 0x417   :  { %v3831_v8 = vpop.xlane.xlu1 %1114  ;;  %v1037_v23 = vpop.xlane.xlu0 %1036 }
 0x41f   :  { %v3835_v42 = vpop.xlane.xlu1 %1102 }
 0x420   :  { %v1118_v44 = vpop.xlane.xlu2 %1117 }
 0x427   :  { %v1043_v39 = vpop.xlane.xlu1 %1042 }
 0x428   :  { %v1049_v22 = vpop.xlane.xlu2 %1048 }
 0x429   :  { %2583 = vrcp.f32 %v1049_v22 }
 0x42a   :  { %2585 = vrcp.f32 %v1046_v0 }
 0x42b   :  { %2587 = vrcp.f32 %v1043_v39 }
 0x42f   :  { %v3839_v43 = vpop.xlane.xlu1 %1093  ;;  %v2584_v60 = vpop.eup %2583 }
 0x430   :  { %v3841_v3 = vpop.xlane.xlu2 %1099  ;;  %v1167_v29 = vmul.f32 %v2584_v60, %v3673_v51  ;;  %v1168_v27 = vmul.f32 %v2584_v60, %v3677_v21  ;;  %v2586_v59 = vpop.eup %2585 }
 0x431   :  { %v1165_v6 = vmul.f32 %v2586_v59, %v3571_v41  ;;  %v1166_v57 = vmul.f32 %v2586_v59, %v3575_v52  ;;  %v2588_v22 = vpop.eup %2587  ;;  %v3849_v51 = vpop.xlane.xlu0 %1087 }
 0x432   :  { %1222 = vmatpush.xpose.msra.mxu2 %v1167_v29  ;;  %1242 = vmatpush.xpose.msra.mxu3 %v1168_v27  ;;  %v1163_v39 = vmul.f32 %v2588_v22, %v3669_v46  ;;  %v1164_v56 = vmul.f32 %v2588_v22, %v3671_v7 }
 0x436   :  { %1223 = vmatpush.xpose.msra.mxu2 %v1165_v6  ;;  %1243 = vmatpush.xpose.msra.mxu3 %v1166_v57 }
 0x437   :  { %v1034_v0 = vpop.xlane.xlu1 %1033 }
 0x438   :  { %v1040_v45 = vpop.xlane.xlu2 %1039 }
 0x439   :  { %2589 = vrcp.f32 %v1040_v45  ;;  %v1028_v45 = vpop.xlane.xlu0 %1027 }
 0x43a   :  { %1224 = vmatpush.xpose.msra.mxu2 %v1163_v39  ;;  %1244 = vmatpush.xpose.msra.mxu3 %v1164_v56  ;;  %2591 = vrcp.f32 %v1037_v23 }
 0x43b   :  { %2593 = vrcp.f32 %v1034_v0 }
 0x43f   :  { %v2590_v21 = vpop.eup %2589  ;;  %v3855_v27 = vpop.xlane.xlu1 %1084 }
 0x440   :  { %v3851_v41 = vpop.xlane.xlu2 %1090  ;;  %v1161_v52 = vmul.f32 %v2590_v21, %v3721_v10  ;;  %v1162_v60 = vmul.f32 %v2590_v21, %v3725_v58  ;;  %v2592_v29 = vpop.eup %2591 }
 0x441   :  { %v1159_v46 = vmul.f32 %v2592_v29, %v3613_v31  ;;  %v1160_v7 = vmul.f32 %v2592_v29, %v3617_v4  ;;  %v2594_v56 = vpop.eup %2593  ;;  %v3861_v31 = vpop.xlane.xlu0 %1078 }
 0x442   :  { %1225 = vmatpush.xpose.msra.mxu2 %v1161_v52  ;;  %1245 = vmatpush.xpose.msra.mxu3 %v1162_v60  ;;  %v1157_v23 = vmul.f32 %v2594_v56, %v3717_v33  ;;  %v1158_v10 = vmul.f32 %v2594_v56, %v3719_v14  ;;  %v4841_v56 = vld [vmem:[#allocation69_spill] sm:$0xff] }
 0x446   :  { %1226 = vmatpush.xpose.msra.mxu2 %v1159_v46  ;;  %1246 = vmatpush.xpose.msra.mxu3 %v1160_v7 }
 0x447   :  { %v1025_v58 = vpop.xlane.xlu1 %1024 }
 0x448   :  { %v1031_v59 = vpop.xlane.xlu2 %1030 }
 0x449   :  { %2595 = vrcp.f32 %v1031_v59  ;;  %v4843_v59 = vld [vmem:[#allocation67_spill] sm:$0xff] }
 0x44a   :  { %2597 = vrcp.f32 %v1028_v45  ;;  %1227 = vmatpush.xpose.msra.mxu2 %v1157_v23  ;;  %1247 = vmatpush.xpose.msra.mxu3 %v1158_v10 }
 0x44b   :  { %2599 = vrcp.f32 %v1025_v58  ;;  %v4844_v58 = vld [vmem:[#allocation56_spill] sm:$0xff] }
 0x44c   :  { %2601 = vrcp.f32 %v1118_v44  ;;  %v3869_v44 = vpop.permute.xlu0 %30 }
 0x44d   :  { %2603 = vrcp.f32 %v3831_v8  ;;  %4837 = vst [vmem:[#allocation59_spill] sm:$0xff] %v3869_v44 }
 0x44e   :  { %2605 = vrcp.f32 %v3822_v5  ;;  %v4839_v5 = vld [vmem:[#allocation7_spill] sm:$0xff] }
 0x44f   :  { %v2596_v6 = vpop.eup %2595  ;;  %v3881_v60 = vadd.f32 %v4839_v5, %v3869_v44  ;;  %2607 = vrcp.f32 %v3833_v53  ;;  %v4847_v5 = vld [vmem:[#allocation57_spill] sm:$0xff] }
 0x450   :  { %v1155_v4 = vmul.f32 %v2596_v6, %v3768_v2  ;;  %v1156_v57 = vmul.f32 %v2596_v6, %v3770_v32  ;;  %v2598_v22 = vpop.eup %2597  ;;  %2609 = vrcp.f32 %v3829_v16 }
 0x451   :  { %v1153_v33 = vmul.f32 %v2598_v22, %v3681_v13  ;;  %v1154_v14 = vmul.f32 %v2598_v22, %v3687_v38  ;;  %v2600_v0 = vpop.eup %2599  ;;  %v4838_v13 = vld [vmem:[#allocation6_spill] sm:$0xff]  ;;  %2611 = vrcp.f32 %v3835_v42  ;;  %v4845_v22 = vld [vmem:[#allocation40_spill] sm:$0xff] }
 0x452   :  { %1228 = vmatpush.xpose.msra.mxu2 %v1155_v4  ;;  %1248 = vmatpush.xpose.msra.mxu3 %v1156_v57  ;;  %v2602_v39 = vpop.eup %2601  ;;  %v1151_v2 = vmul.f32 %v2600_v0, %v3763_v28  ;;  %v1152_v32 = vmul.f32 %v2600_v0, %v3765_v17  ;;  %v3877_v38 = vadd.f32 %v4838_v13, %v3869_v44  ;;  %2613 = vrcp.f32 %v3841_v3 }
 0x453   :  { %v1213_v21 = vmul.f32 %v2602_v39, %v3651_v25  ;;  %v1214_v8 = vmul.f32 %v2602_v39, %v3659_v61  ;;  %v2604_v52 = vpop.eup %2603  ;;  %2615 = vrcp.f32 %v3837_v9 }
 0x454   :  { %v1211_v25 = vmul.f32 %v2604_v52, %v3619_v18  ;;  %v1212_v61 = vmul.f32 %v2604_v52, %v3623_v37  ;;  %v2606_v28 = vpop.eup %2605  ;;  %2617 = vrcp.f32 %v3839_v43 }
 0x455   :  { %v1209_v17 = vmul.f32 %v2606_v28, %v3599_v20  ;;  %v1210_v29 = vmul.f32 %v2606_v28, %v3603_v54  ;;  %v2608_v46 = vpop.eup %2607  ;;  %v4840_v54 = vld [vmem:[#allocation68_spill] sm:$0xff]  ;;  %2619 = vrcp.f32 %v3851_v41 }
 0x456   :  { %1229 = vmatpush.xpose.msra.mxu2 %v1153_v33  ;;  %1249 = vmatpush.xpose.msra.mxu3 %v1154_v14  ;;  %v1207_v53 = vmul.f32 %v2608_v46, %v3577_v36  ;;  %v1208_v18 = vmul.f32 %v2608_v46, %v3581_v35  ;;  %v2610_v7 = vpop.eup %2609  ;;  %2621 = vrcp.f32 %v3849_v51  ;;  %v4846_v33 = vld [vmem:[#allocation41_spill] sm:$0xff] }
 0x457   :  { %v1205_v37 = vmul.f32 %v2610_v7, %v3563_v1  ;;  %v1206_v20 = vmul.f32 %v2610_v7, %v3566_v26  ;;  %v2612_v16 = vpop.eup %2611  ;;  %v4842_v26 = vld [vmem:[#allocation66_spill] sm:$0xff]  ;;  %2623 = vrcp.f32 %v3855_v27 }
 0x458   :  { %v1203_v42 = vmul.f32 %v2612_v16, %v4840_v54  ;;  %v1204_v36 = vmul.f32 %v2612_v16, %v4841_v56  ;;  %v2614_v45 = vpop.eup %2613  ;;  %v4855_v54 = vld [vmem:[#allocation23_spill] sm:$0xff] }
 0x459   :  { %v1201_v35 = vmul.f32 %v2614_v45, %v3703_v48  ;;  %v1202_v1 = vmul.f32 %v2614_v45, %v3706_v19  ;;  %v2616_v3 = vpop.eup %2615  ;;  %v1082_v19 = vpop.xlane.xlu2 %1081 }
 0x45a   :  { %1230 = vmatpush.xpose.msra.mxu2 %v1151_v2  ;;  %1250 = vmatpush.xpose.msra.mxu3 %v1152_v32  ;;  %v1199_v9 = vmul.f32 %v2616_v3, %v4842_v26  ;;  %v1200_v23 = vmul.f32 %v2616_v3, %v4843_v59  ;;  %v2618_v10 = vpop.eup %2617  ;;  %2625 = vrcp.f32 %v1082_v19 }
 0x45b   :  { %v1197_v43 = vmul.f32 %v2618_v10, %v3697_v12  ;;  %v1198_v48 = vmul.f32 %v2618_v10, %v4844_v58  ;;  %v2620_v6 = vpop.eup %2619  ;;  %2627 = vrcp.f32 %v3861_v31  ;;  %v4859_v10 = vld [vmem:[#allocation25_spill] sm:$0xff] }
 0x45c   :  { %v1195_v41 = vmul.f32 %v2620_v6, %v3749_v15  ;;  %v1196_v4 = vmul.f32 %v2620_v6, %v3752_v62  ;;  %v2622_v57 = vpop.eup %2621  ;;  %v1073_v62 = vpop.xlane.xlu1 %1072 }
 0x45d   :  { %1231 = vmatmul.f32.vlgmr.msra.gmra.mxu2 %v3877_v38  ;;  %1251 = vmatmul.f32.vlgmr.msra.gmra.mxu3 %v3881_v60  ;;  %v1193_v51 = vmul.f32 %v2622_v57, %v4845_v22  ;;  %v1194_v12 = vmul.f32 %v2622_v57, %v4846_v33  ;;  %v2624_v14 = vpop.eup %2623 }
 0x45e   :  { %1255 = vmatpush.xpose.msrb.mxu2 %v1213_v21  ;;  %1275 = vmatpush.xpose.msrb.mxu3 %v1214_v8  ;;  %v1191_v27 = vmul.f32 %v2624_v14, %v3745_v55  ;;  %v1192_v15 = vmul.f32 %v2624_v14, %v3747_v63 }
 0x460   :  { %v2626_v39 = vpop.eup %2625 }
 0x461   :  { %v1076_v0 = vpop.xlane.xlu2 %1075  ;;  %v1189_v2 = vmul.f32 %v2626_v39, %v3790_v30  ;;  %v1190_v32 = vmul.f32 %v2626_v39, %v3792_v50  ;;  %v2628_v21 = vpop.eup %2627 }
 0x462   :  { %1256 = vmatpush.xpose.msrb.mxu2 %v1211_v25  ;;  %1276 = vmatpush.xpose.msrb.mxu3 %v1212_v61  ;;  %2629 = vrcp.f32 %v1076_v0  ;;  %v1187_v31 = vmul.f32 %v2628_v21, %v3729_v11  ;;  %v1188_v8 = vmul.f32 %v2628_v21, %v3735_v40  ;;  %v4848_v11 = vld [vmem:[#allocation58_spill] sm:$0xff] }
 0x463   :  { %2631 = vrcp.f32 %v1073_v62 }
 0x466   :  { %1257 = vmatpush.xpose.msrb.mxu2 %v1209_v17  ;;  %1277 = vmatpush.xpose.msrb.mxu3 %v1210_v29  ;;  %v4852_v17 = vld [vmem:[#allocation20_spill] sm:$0xff] }
 0x468   :  { %v2630_v55 = vpop.eup %2629 }
 0x469   :  { %v1185_v63 = vmul.f32 %v2630_v55, %v3802_v24  ;;  %v1186_v52 = vmul.f32 %v2630_v55, %v3805_v47  ;;  %v2632_v13 = vpop.eup %2631  ;;  %v4849_v24 = vld [vmem:[#allocation3_spill] sm:$0xff] }
 0x46a   :  { %1258 = vmatpush.xpose.msrb.mxu2 %v1207_v53  ;;  %1278 = vmatpush.xpose.msrb.mxu3 %v1208_v18  ;;  %v1183_v30 = vmul.f32 %v2632_v13, %v3783_v34  ;;  %v1184_v50 = vmul.f32 %v2632_v13, %v3785_v49  ;;  %v4850_v49 = vld [vmem:[#allocation4_spill] sm:$0xff]  ;;  %v4853_v53 = vld [vmem:[#allocation22_spill] sm:$0xff] }
 0x46e   :  { %1259 = vmatpush.xpose.msrb.mxu2 %v1205_v37  ;;  %1279 = vmatpush.xpose.msrb.mxu3 %v1206_v20  ;;  %v4854_v37 = vld [vmem:[#allocation8_spill] sm:$0xff] }
 0x472   :  { %1260 = vmatpush.xpose.msrb.mxu2 %v1203_v42  ;;  %1280 = vmatpush.xpose.msrb.mxu3 %v1204_v36  ;;  %v4856_v36 = vld [vmem:[#allocation13_spill] sm:$0xff] }
 0x476   :  { %1261 = vmatpush.xpose.msrb.mxu2 %v1201_v35  ;;  %1281 = vmatpush.xpose.msrb.mxu3 %v1202_v1  ;;  %v4857_v1 = vld [vmem:[#allocation24_spill] sm:$0xff] }
 0x47a   :  { %1262 = vmatpush.xpose.msrb.mxu2 %v1199_v9  ;;  %1282 = vmatpush.xpose.msrb.mxu3 %v1200_v23  ;;  %v4858_v9 = vld [vmem:[#allocation14_spill] sm:$0xff] }
 0x47e   :  { %1263 = vmatpush.xpose.msrb.mxu2 %v1197_v43  ;;  %1283 = vmatpush.xpose.msrb.mxu3 %v1198_v48  ;;  %v4860_v48 = vld [vmem:[#allocation15_spill] sm:$0xff] }
 0x482   :  { %1264 = vmatpush.xpose.msrb.mxu2 %v1195_v41  ;;  %1284 = vmatpush.xpose.msrb.mxu3 %v1196_v4  ;;  %v4861_v4 = vld [vmem:[#allocation26_spill] sm:$0xff] }
 0x486   :  { %1265 = vmatpush.xpose.msrb.mxu2 %v1193_v51  ;;  %1285 = vmatpush.xpose.msrb.mxu3 %v1194_v12  ;;  %v4862_v51 = vld [vmem:[#allocation18_spill] sm:$0xff] }
 0x48a   :  { %1266 = vmatpush.xpose.msrb.mxu2 %v1191_v27  ;;  %1286 = vmatpush.xpose.msrb.mxu3 %v1192_v15  ;;  %v4863_v15 = vld [vmem:[#allocation27_spill] sm:$0xff] }
 0x48e   :  { %1267 = vmatpush.xpose.msrb.mxu2 %v1189_v2  ;;  %1287 = vmatpush.xpose.msrb.mxu3 %v1190_v32 }
 0x492   :  { %1268 = vmatpush.xpose.msrb.mxu2 %v1187_v31  ;;  %1288 = vmatpush.xpose.msrb.mxu3 %v1188_v8 }
 0x496   :  { %1269 = vmatpush.xpose.msrb.mxu2 %v1185_v63  ;;  %1289 = vmatpush.xpose.msrb.mxu3 %v1186_v52  ;;  %v4864_v63 = vld [vmem:[#allocation19_spill] sm:$0xff] }
 0x49a   :  { %1270 = vmatpush.xpose.msrb.mxu2 %v1183_v30  ;;  %1290 = vmatpush.xpose.msrb.mxu3 %v1184_v50  ;;  %v4865_v50 = vld [vmem:[#allocation28_spill] sm:$0xff] }
 0x49d   :  { %1271 = vmatmul.f32.vlgmr.msrb.gmra.mxu2 %v3877_v38  ;;  %1291 = vmatmul.f32.vlgmr.msrb.gmra.mxu3 %v3881_v60  ;;  %v4851_v38 = vld [vmem:[#allocation5_spill] sm:$0xff] }
 0x49e   :  { %1514 = vmatpush.msra.mxu2 %v4847_v5  ;;  %1627 = vmatpush.msra.mxu3 %v4848_v11 }
 0x4a7   :  { %v1323_v40 = vpop.trf.xlu2 }
 0x4a8   :  { %v1371_v47 = vsel %vm42_vm1, %v1323_v40, %v4849_v24 }
 0x4a9   :  { %2372 = vmatmul.msk.f32.vlgmr.msra.gmra.mxu2 %vm412_vm2, %v1371_v47  ;;  %2404 = vmatmul.msk.f32.vlgmr.msra.gmra.mxu3 %vm412_vm2, %v1371_v47  ;;  %v4868_v47 = vld [vmem:[#allocation21_spill] sm:$0xff] }
 0x4af   :  { %v1324_v34 = vpop.trf.xlu2 }
 0x4b0   :  { %v1372_v25 = vsel %vm42_vm1, %v1324_v34, %v4850_v49 }
 0x4b1   :  { %2373 = vmatmul.msk.f32.gmra.mxu2 %vm412_vm2, %v1372_v25  ;;  %2405 = vmatmul.msk.f32.gmra.mxu3 %vm412_vm2, %v1372_v25 }
 0x4b7   :  { %v1325_v61 = vpop.trf.xlu2 }
 0x4b8   :  { %v1373_v60 = vsel %vm42_vm1, %v1325_v61, %v4851_v38  ;;  %v4869_v61 = vld [vmem:[#allocation29_spill] sm:$0xff] }
 0x4b9   :  { %2374 = vmatmul.msk.f32.gmra.mxu2 %vm412_vm2, %v1373_v60  ;;  %2406 = vmatmul.msk.f32.gmra.mxu3 %vm412_vm2, %v1373_v60 }
 0x4ba   :  { %v1355_v19 = vpop.trf.xlu1 }
 0x4bb   :  { %v1387_v5 = vsel %vm42_vm1, %v1355_v19, %v4865_v50 }
 0x4bf   :  { %v1326_v28 = vpop.trf.xlu2 }
 0x4c0   :  { %v1374_v29 = vsel %vm42_vm1, %v1326_v28, %v4852_v17 }
 0x4c1   :  { %2375 = vmatmul.msk.f32.gmra.mxu2 %vm412_vm2, %v1374_v29  ;;  %2407 = vmatmul.msk.f32.gmra.mxu3 %vm412_vm2, %v1374_v29  ;;  %v4870_v29 = vld [vmem:[#allocation30_spill] sm:$0xff] }
 0x4c2   :  { %v1356_v12 = vpop.trf.xlu1 }
 0x4c3   :  { %v1388_v34 = vsel %vm42_vm1, %v1356_v12, %v4868_v47 }
 0x4c7   :  { %v1327_v46 = vpop.trf.xlu2 }
 0x4c8   :  { %v1375_v18 = vsel %vm42_vm1, %v1327_v46, %v4853_v53 }
 0x4c9   :  { %2376 = vmatmul.msk.f32.gmra.mxu2 %vm412_vm2, %v1375_v18  ;;  %2408 = vmatmul.msk.f32.gmra.mxu3 %vm412_vm2, %v1375_v18 }
 0x4ca   :  { %v1357_v62 = vpop.trf.xlu1 }
 0x4cb   :  { %v1389_v38 = vsel %vm42_vm1, %v1357_v62, %v4869_v61  ;;  %v4881_v61 = vld [vmem:[#allocation47_spill] sm:$0xff] }
 0x4cf   :  { %v1328_v7 = vpop.trf.xlu2 }
 0x4d0   :  { %v1376_v20 = vsel %vm42_vm1, %v1328_v7, %v4854_v37  ;;  %v4871_v37 = vld [vmem:[#allocation31_spill] sm:$0xff] }
 0x4d1   :  { %2377 = vmatmul.msk.f32.gmra.mxu2 %vm412_vm2, %v1376_v20  ;;  %2409 = vmatmul.msk.f32.gmra.mxu3 %vm412_vm2, %v1376_v20 }
 0x4d2   :  { %v1358_v30 = vpop.trf.xlu1 }
 0x4d3   :  { %v1390_v46 = vsel %vm42_vm1, %v1358_v30, %v4870_v29  ;;  %v4880_v30 = vld [vmem:[#allocation46_spill] sm:$0xff] }
 0x4d7   :  { %v1329_v16 = vpop.trf.xlu2 }
 0x4d8   :  { %v1377_v42 = vsel %vm42_vm1, %v1329_v16, %v4855_v54 }
 0x4d9   :  { %2378 = vmatmul.msk.f32.gmra.mxu2 %vm412_vm2, %v1377_v42  ;;  %2410 = vmatmul.msk.f32.gmra.mxu3 %vm412_vm2, %v1377_v42 }
 0x4da   :  { %v1359_v24 = vpop.trf.xlu1 }
 0x4db   :  { %v1391_v20 = vsel %vm42_vm1, %v1359_v24, %v4871_v37  ;;  %v4882_v37 = vld [vmem:[#allocation48_spill] sm:$0xff] }
 0x4df   :  { %v1330_v56 = vpop.trf.xlu2 }
 0x4e0   :  { %v1378_v45 = vsel %vm42_vm1, %v1330_v56, %v4856_v36  ;;  %v1232_v14 = vpop.f32.mrf.mxu2  ;;  %v1252_v0 = vpop.f32.mrf.mxu3  ;;  %v4872_v56 = vld [vmem:[#allocation34_spill] sm:$0xff] }
 0x4e1   :  { %2379 = vmatmul.msk.f32.gmra.mxu2 %vm412_vm2, %v1378_v45  ;;  %2411 = vmatmul.msk.f32.gmra.mxu3 %vm412_vm2, %v1378_v45  ;;  %v1253_v8 = vadd.f32 %v1252_v0, %v1232_v14  ;;  %v4877_v0 = vld [vmem:[#allocation42_spill] sm:$0xff] }
 0x4e2   :  { %v1360_v60 = vpop.trf.xlu1 }
 0x4e3   :  { %v1392_v36 = vsel %vm42_vm1, %v1360_v60, %v4872_v56 }
 0x4e7   :  { %v1331_v35 = vpop.trf.xlu2 }
 0x4e8   :  { %v1379_v3 = vsel %vm42_vm1, %v1331_v35, %v4857_v1 }
 0x4e9   :  { %2380 = vmatmul.msk.f32.gmra.mxu2 %vm412_vm2, %v1379_v3  ;;  %2412 = vmatmul.msk.f32.gmra.mxu3 %vm412_vm2, %v1379_v3  ;;  %v4873_v3 = vld [vmem:[#allocation37_spill] sm:$0xff] }
 0x4ea   :  { %v1361_v53 = vpop.trf.xlu1 }
 0x4ef   :  { %v1332_v26 = vpop.trf.xlu2 }
 0x4f0   :  { %v1380_v59 = vsel %vm42_vm1, %v1332_v26, %v4858_v9  ;;  %v1393_v26 = vsel %vm42_vm1, %v1361_v53, %v4873_v3 }
 0x4f1   :  { %2381 = vmatmul.msk.f32.gmra.mxu2 %vm412_vm2, %v1380_v59  ;;  %2413 = vmatmul.msk.f32.gmra.mxu3 %vm412_vm2, %v1380_v59 }
 0x4f2   :  { %v1362_v42 = vpop.trf.xlu1 }
 0x4f7   :  { %v1333_v23 = vpop.trf.xlu2 }
 0x4f8   :  { %v1381_v43 = vsel %vm42_vm1, %v1333_v23, %v4859_v10  ;;  %v4874_v23 = vld [vmem:[#allocation38_spill] sm:$0xff] }
 0x4f9   :  { %2382 = vmatmul.msk.f32.gmra.mxu2 %vm412_vm2, %v1381_v43  ;;  %2414 = vmatmul.msk.f32.gmra.mxu3 %vm412_vm2, %v1381_v43  ;;  %v1394_v10 = vsel %vm42_vm1, %v1362_v42, %v4874_v23 }
 0x4fa   :  { %v1363_v1 = vpop.trf.xlu1 }
 0x4ff   :  { %v1334_v58 = vpop.trf.xlu2 }
 0x500   :  { %v1382_v6 = vsel %vm42_vm1, %v1334_v58, %v4860_v48 }
 0x501   :  { %2383 = vmatmul.msk.f32.gmra.mxu2 %vm412_vm2, %v1382_v6  ;;  %2415 = vmatmul.msk.f32.gmra.mxu3 %vm412_vm2, %v1382_v6  ;;  %v4875_v6 = vld [vmem:[#allocation39_spill] sm:$0xff] }
 0x502   :  { %v1364_v43 = vpop.trf.xlu1  ;;  %v1395_v19 = vsel %vm42_vm1, %v1363_v1, %v4875_v6 }
 0x507   :  { %v1335_v41 = vpop.trf.xlu2 }
 0x508   :  { %v1383_v57 = vsel %vm42_vm1, %v1335_v41, %v4861_v4 }
 0x509   :  { %2384 = vmatmul.msk.f32.gmra.mxu2 %vm412_vm2, %v1383_v57  ;;  %2416 = vmatmul.msk.f32.gmra.mxu3 %vm412_vm2, %v1383_v57 }
 0x50a   :  { %v1365_v41 = vpop.trf.xlu1 }
 0x50f   :  { %v1336_v22 = vpop.trf.xlu2 }
 0x510   :  { %v1384_v33 = vsel %vm42_vm1, %v1336_v22, %v4862_v51  ;;  %v4876_v22 = vld [vmem:[#allocation43_spill] sm:$0xff] }
 0x511   :  { %2385 = vmatmul.msk.f32.gmra.mxu2 %vm412_vm2, %v1384_v33  ;;  %2417 = vmatmul.msk.f32.gmra.mxu3 %vm412_vm2, %v1384_v33  ;;  %v1396_v51 = vsel %vm42_vm1, %v1364_v43, %v4876_v22 }
 0x512   :  { %v1366_v14 = vpop.trf.xlu1 }
 0x517   :  { %v1337_v27 = vpop.trf.xlu2 }
 0x518   :  { %v1385_v39 = vsel %vm42_vm1, %v1337_v27, %v4863_v15  ;;  %v1397_v27 = vsel %vm42_vm1, %v1365_v41, %v4877_v0 }
 0x519   :  { %2386 = vmatmul.msk.f32.gmra.mxu2 %vm412_vm2, %v1385_v39  ;;  %2418 = vmatmul.msk.f32.gmra.mxu3 %vm412_vm2, %v1385_v39 }
 0x51a   :  { %v1367_v62 = vpop.trf.xlu1 }
 0x51f   :  { %v1338_v31 = vpop.trf.xlu2 }
 0x520   :  { %v1272_v2 = vpop.f32.mrf.mxu2  ;;  %v1292_v32 = vpop.f32.mrf.mxu3  ;;  %v1386_v52 = vsel %vm42_vm1, %v1338_v31, %v4864_v63 }
 0x521   :  { %v1293_v21 = vadd.f32 %v1292_v32, %v1272_v2  ;;  %2387 = vmatmul.msk.f32.gmra.mxu2 %vm412_vm2, %v1386_v52  ;;  %2419 = vmatmul.msk.f32.gmra.mxu3 %vm412_vm2, %v1386_v52  ;;  %v4878_v2 = vld [vmem:[#allocation44_spill] sm:$0xff] }
 0x522   :  { %v1398_v32 = vsel %vm42_vm1, %v1366_v14, %v4878_v2  ;;  %v1368_v63 = vpop.trf.xlu1 }
 0x523   :  { %v1297_v55 = vrot.slane %v1293_v21, 4  ;;  %v1400_v50 = vsel %vm42_vm1, %v1368_v63, %v4880_v30 }
 0x525   :  { %v1298_v13 = vsel %vm49_vm0, %v1253_v8, %v1297_v55  ;;  %v4879_v8 = vld [vmem:[#allocation45_spill] sm:$0xff] }
 0x526   :  { %1300 = vst [vmem:[%s4637_s4] sm:$0xff] %v1298_v13  ;;  %v1399_v55 = vsel %vm42_vm1, %v1367_v62, %v4879_v8 }
 0x529   :  { %2388 = vmatmul.msk.f32.gmra.mxu2 %vm412_vm2, %v1387_v5  ;;  %2420 = vmatmul.msk.f32.gmra.mxu3 %vm412_vm2, %v1387_v5 }
 0x52a   :  { %v1369_v5 = vpop.trf.xlu1 }
 0x52c   :  { %v4001_v11 = vpop.f32.mrf.mxu2  ;;  %v4003_v40 = vpop.f32.mrf.mxu3 }
 0x52d   :  { %4866 = vst [vmem:[#allocation50_spill] sm:$0xff] %v4001_v11 }
 0x52e   :  { %4867 = vst [vmem:[#allocation32_spill] sm:$0xff] %v4003_v40 }
 0x531   :  { %2389 = vmatmul.msk.f32.gmra.mxu2 %vm412_vm2, %v1388_v34  ;;  %2421 = vmatmul.msk.f32.gmra.mxu3 %vm412_vm2, %v1388_v34 }
 0x534   :  { %v4009_v49 = vpop.f32.mrf.mxu2  ;;  %v4011_v25 = vpop.f32.mrf.mxu3 }
 0x539   :  { %2390 = vmatmul.msk.f32.gmra.mxu2 %vm412_vm2, %v1389_v38  ;;  %2422 = vmatmul.msk.f32.gmra.mxu3 %vm412_vm2, %v1389_v38  ;;  %v1401_v38 = vsel %vm42_vm1, %v1369_v5, %v4881_v61 }
 0x53c   :  { %v4017_v28 = vpop.f32.mrf.mxu2  ;;  %v4019_v17 = vpop.f32.mrf.mxu3 }
 0x541   :  { %2391 = vmatmul.msk.f32.gmra.mxu2 %vm412_vm2, %v1390_v46  ;;  %2423 = vmatmul.msk.f32.gmra.mxu3 %vm412_vm2, %v1390_v46  ;;  %v1370_v46 = vpop.trf.xlu1 }
 0x544   :  { %v4025_v18 = vpop.f32.mrf.mxu2  ;;  %v4027_v7 = vpop.f32.mrf.mxu3 }
 0x549   :  { %2392 = vmatmul.msk.f32.gmra.mxu2 %vm412_vm2, %v1391_v20  ;;  %2424 = vmatmul.msk.f32.gmra.mxu3 %vm412_vm2, %v1391_v20  ;;  %v1402_v20 = vsel %vm42_vm1, %v1370_v46, %v4882_v37 }
 0x54c   :  { %v4033_v16 = vpop.f32.mrf.mxu2  ;;  %v4035_v54 = vpop.f32.mrf.mxu3 }
 0x551   :  { %2393 = vmatmul.msk.f32.gmra.mxu2 %vm412_vm2, %v1392_v36  ;;  %2425 = vmatmul.msk.f32.gmra.mxu3 %vm412_vm2, %v1392_v36  ;;  %v1725_v36 = vmax.f32 %v4001_v11, %v4003_v40 }
 0x554   :  { %v4041_v45 = vpop.f32.mrf.mxu2  ;;  %v4043_v35 = vpop.f32.mrf.mxu3 }
 0x559   :  { %2394 = vmatmul.msk.f32.gmra.mxu2 %vm412_vm2, %v1393_v26  ;;  %2426 = vmatmul.msk.f32.gmra.mxu3 %vm412_vm2, %v1393_v26 }
 0x55c   :  { %v4049_v9 = vpop.f32.mrf.mxu2  ;;  %v4051_v59 = vpop.f32.mrf.mxu3 }
 0x561   :  { %2395 = vmatmul.msk.f32.gmra.mxu2 %vm412_vm2, %v1394_v10  ;;  %2427 = vmatmul.msk.f32.gmra.mxu3 %vm412_vm2, %v1394_v10 }
 0x564   :  { %v4057_v58 = vpop.f32.mrf.mxu2  ;;  %v4059_v48 = vpop.f32.mrf.mxu3 }
 0x569   :  { %2396 = vmatmul.msk.f32.gmra.mxu2 %vm412_vm2, %v1395_v19  ;;  %2428 = vmatmul.msk.f32.gmra.mxu3 %vm412_vm2, %v1395_v19 }
 0x56c   :  { %v4065_v4 = vpop.f32.mrf.mxu2  ;;  %v4067_v57 = vpop.f32.mrf.mxu3 }
 0x571   :  { %2397 = vmatmul.msk.f32.gmra.mxu2 %vm412_vm2, %v1396_v51  ;;  %2429 = vmatmul.msk.f32.gmra.mxu3 %vm412_vm2, %v1396_v51 }
 0x574   :  { %v4073_v33 = vpop.f32.mrf.mxu2  ;;  %v4075_v12 = vpop.f32.mrf.mxu3 }
 0x579   :  { %2398 = vmatmul.msk.f32.gmra.mxu2 %vm412_vm2, %v1397_v27  ;;  %2430 = vmatmul.msk.f32.gmra.mxu3 %vm412_vm2, %v1397_v27 }
 0x57c   :  { %v4081_v15 = vpop.f32.mrf.mxu2  ;;  %v4083_v39 = vpop.f32.mrf.mxu3 }
 0x581   :  { %2399 = vmatmul.msk.f32.gmra.mxu2 %vm412_vm2, %v1398_v32  ;;  %2431 = vmatmul.msk.f32.gmra.mxu3 %vm412_vm2, %v1398_v32 }
 0x584   :  { %v4089_v21 = vpop.f32.mrf.mxu2  ;;  %v4091_v31 = vpop.f32.mrf.mxu3 }
 0x589   :  { %2400 = vmatmul.msk.f32.gmra.mxu2 %vm412_vm2, %v1399_v55  ;;  %2432 = vmatmul.msk.f32.gmra.mxu3 %vm412_vm2, %v1399_v55 }
 0x58c   :  { %v4097_v52 = vpop.f32.mrf.mxu2  ;;  %v4099_v13 = vpop.f32.mrf.mxu3 }
 0x58d   :  { %v1761_v23 = vmax.f32 %v4097_v52, %v4099_v13 }
 0x591   :  { %2401 = vmatmul.msk.f32.gmra.mxu2 %vm412_vm2, %v1400_v50  ;;  %2433 = vmatmul.msk.f32.gmra.mxu3 %vm412_vm2, %v1400_v50 }
 0x594   :  { %v1555_v24 = vpop.f32.mrf.mxu2  ;;  %v1668_v47 = vpop.f32.mrf.mxu3 }
 0x595   :  { %v1764_v34 = vmax.f32 %v1555_v24, %v1668_v47 }
 0x597   :  { %1765 = vmax.xlane.f32.xlu0 %v1764_v34 }
 0x599   :  { %2402 = vmatmul.msk.f32.gmra.mxu2 %vm412_vm2, %v1401_v38  ;;  %2434 = vmatmul.msk.f32.gmra.mxu3 %vm412_vm2, %v1401_v38 }
 0x59c   :  { %v4109_v60 = vpop.f32.mrf.mxu2  ;;  %v4111_v29 = vpop.f32.mrf.mxu3 }
 0x59d   :  { %v1767_v53 = vmax.f32 %v4109_v60, %v4111_v29 }
 0x59f   :  { %1768 = vmax.xlane.f32.xlu2 %v1767_v53 }
 0x5a1   :  { %2403 = vmatmul.msk.f32.gmra.mxu2 %vm412_vm2, %v1402_v20  ;;  %2435 = vmatmul.msk.f32.gmra.mxu3 %vm412_vm2, %v1402_v20 }
 0x5a4   :  { %v4119_v42 = vpop.f32.mrf.mxu2  ;;  %v4121_v56 = vpop.f32.mrf.mxu3 }
 0x5a5   :  { %4883 = vst [vmem:[#allocation33_spill] sm:$0xff] %v4119_v42  ;;  %v1770_v1 = vmax.f32 %v4119_v42, %v4121_v56 }
 0x5a6   :  { %4884 = vst [vmem:[#allocation51_spill] sm:$0xff] %v4121_v56 }
 0x5a7   :  { %1726 = vmax.xlane.f32.xlu2 %v1725_v36  ;;  %1771 = vmax.xlane.f32.xlu0 %v1770_v1 }
 0x5ac   :  { %v4127_v3 = vpop.f32.mrf.mxu2  ;;  %v4129_v26 = vpop.f32.mrf.mxu3 }
 0x5ad   :  { %4885 = vst [vmem:[#allocation35_spill] sm:$0xff] %v4127_v3 }
 0x5ae   :  { %4886 = vst [vmem:[#allocation36_spill] sm:$0xff] %v4129_v26 }
 0x5af   :  { %1762 = vmax.xlane.f32.xlu0 %v1761_v23 }
 0x5b4   :  { %v4133_v10 = vpop.f32.mrf.mxu2  ;;  %v4135_v43 = vpop.f32.mrf.mxu3 }
 0x5b5   :  { %4887 = vst [vmem:[#allocation52_spill] sm:$0xff] %v4133_v10 }
 0x5b6   :  { %4888 = vst [vmem:[#allocation53_spill] sm:$0xff] %v4135_v43 }
 0x5bc   :  { %v4137_v6 = vpop.f32.mrf.mxu2  ;;  %v4139_v19 = vpop.f32.mrf.mxu3 }
 0x5c4   :  { %v4141_v41 = vpop.f32.mrf.mxu2  ;;  %v4143_v22 = vpop.f32.mrf.mxu3 }
 0x5cc   :  { %v4145_v51 = vpop.f32.mrf.mxu2  ;;  %v4147_v14 = vpop.f32.mrf.mxu3 }
 0x5d4   :  { %v4149_v0 = vpop.f32.mrf.mxu2  ;;  %v4151_v27 = vpop.f32.mrf.mxu3 }
 0x5dc   :  { %v4153_v62 = vpop.f32.mrf.mxu2  ;;  %v4155_v2 = vpop.f32.mrf.mxu3 }
 0x5dd   :  { %4889 = vst [vmem:[#allocation54_spill] sm:$0xff] %v4155_v2 }
 0x5e4   :  { %v4157_v32 = vpop.f32.mrf.mxu2  ;;  %v4159_v8 = vpop.f32.mrf.mxu3 }
 0x5ec   :  { %v4161_v55 = vpop.f32.mrf.mxu2  ;;  %v4163_v63 = vpop.f32.mrf.mxu3 }
 0x5f4   :  { %v4165_v30 = vpop.f32.mrf.mxu2  ;;  %v4167_v50 = vpop.f32.mrf.mxu3 }
 0x5fc   :  { %v4169_v5 = vpop.f32.mrf.mxu2  ;;  %v4171_v34 = vpop.f32.mrf.mxu3 }
 0x604   :  { %v4173_v61 = vpop.f32.mrf.mxu2  ;;  %v4175_v38 = vpop.f32.mrf.mxu3 }
 0x60a   :  { %v1766_v37 = vpop.xlane.xlu0 %1765 }
 0x60b   :  { %v1847_v23 = vsub.f32 %v1555_v24, %v1766_v37  ;;  %v1848_v44 = vsub.f32 %v1668_v47, %v1766_v37  ;;  %v1758_v47 = vmax.f32 %v4089_v21, %v4091_v31 }
 0x60c   :  { %v4177_v46 = vpop.f32.mrf.mxu2  ;;  %v4179_v53 = vpop.f32.mrf.mxu3 }
 0x60d   :  { %v1937_v26 = vmul.f32 1.442695, %v1847_v23  ;;  %v1939_v10 = vmul.f32 1.442695, %v1848_v44 }
 0x60f   :  { %2633 = vpow2.f32 %v1937_v26 }
 0x610   :  { %2635 = vpow2.f32 %v1939_v10 }
 0x614   :  { %v4181_v20 = vpop.f32.mrf.mxu2  ;;  %v4183_v36 = vpop.f32.mrf.mxu3 }
 0x61a   :  { %v4185_v1 = vpop.xlane.xlu0 %1771 }
 0x61b   :  { %4890 = vst [vmem:[#allocation55_spill] sm:$0xff] %v4185_v1 }
 0x61c   :  { %v4187_v40 = vpop.f32.mrf.mxu2  ;;  %v4189_v11 = vpop.f32.mrf.mxu3 }
 0x61d   :  { %v1815_v3 = vmax.f32 %v4187_v40, %v4189_v11 }
 0x61f   :  { %1816 = vmax.xlane.f32.xlu0 %v1815_v3  ;;  %v4203_v3 = vpop.eup %2633 }
 0x620   :  { %4891 = vst [vmem:[#allocation49_spill] sm:$0xff] %v4203_v3 }
 0x622   :  { %v1763_v43 = vpop.xlane.xlu0 %1762 }
 0x623   :  { %v1845_v56 = vsub.f32 %v4097_v52, %v1763_v43  ;;  %v1846_v42 = vsub.f32 %v4099_v13, %v1763_v43  ;;  %v4205_v52 = vpop.eup %2635  ;;  %v1812_v13 = vmax.f32 %v4181_v20, %v4183_v36 }
 0x624   :  { %v4195_v1 = vpop.f32.mrf.mxu2  ;;  %v4197_v24 = vpop.f32.mrf.mxu3  ;;  %4892 = vst [vmem:[#allocation16_spill] sm:$0xff] %v4205_v52  ;;  %v2052_v26 = vadd.f32 %v4205_v52, %v4203_v3 }
 0x625   :  { %v1818_v37 = vmax.f32 %v4195_v1, %v4197_v24  ;;  %v1933_v23 = vmul.f32 1.442695, %v1845_v56  ;;  %v1935_v44 = vmul.f32 1.442695, %v1846_v42  ;;  %v1755_v42 = vmax.f32 %v4081_v15, %v4083_v39 }
 0x627   :  { %1759 = vmax.xlane.f32.xlu0 %v1758_v47  ;;  %1819 = vmax.xlane.f32.xlu1 %v1818_v37  ;;  %2637 = vpow2.f32 %v1933_v23  ;;  %v1809_v47 = vmax.f32 %v4177_v46, %v4179_v53  ;;  %v1752_v37 = vmax.f32 %v4073_v33, %v4075_v12  ;;  %v1806_v23 = vmax.f32 %v4173_v61, %v4175_v38 }
 0x628   :  { %2639 = vpow2.f32 %v1935_v44  ;;  %v1749_v44 = vmax.f32 %v4065_v4, %v4067_v57 }
 0x62d   :  { %v4211_v10 = vpop.eup %2637 }
 0x62e   :  { %4893 = vst [vmem:[#allocation17_spill] sm:$0xff] %v4211_v10  ;;  %v4213_v56 = vpop.eup %2639 }
 0x62f   :  { %1813 = vmax.xlane.f32.xlu0 %v1812_v13  ;;  %2053 = vadd.xlane.f32.xlu1 %v2052_v26  ;;  %4894 = vst [vmem:[#allocation64_spill] sm:$0xff] %v4213_v56  ;;  %v2049_v43 = vadd.f32 %v4213_v56, %v4211_v10  ;;  %v1803_v13 = vmax.f32 %v4169_v5, %v4171_v34 }
 0x630   :  { %v1746_v26 = vmax.f32 %v4057_v58, %v4059_v48 }
 0x637   :  { %1756 = vmax.xlane.f32.xlu0 %v1755_v42  ;;  %2050 = vadd.xlane.f32.xlu1 %v2049_v43  ;;  %v1800_v42 = vmax.f32 %v4165_v30, %v4167_v50  ;;  %v1743_v43 = vmax.f32 %v4049_v9, %v4051_v59 }
 0x63f   :  { %1810 = vmax.xlane.f32.xlu0 %v1809_v47  ;;  %v1797_v47 = vmax.f32 %v4161_v55, %v4163_v63 }
 0x647   :  { %1753 = vmax.xlane.f32.xlu0 %v1752_v37  ;;  %v1740_v37 = vmax.f32 %v4041_v45, %v4043_v35 }
 0x64f   :  { %1807 = vmax.xlane.f32.xlu0 %v1806_v23  ;;  %v1794_v23 = vmax.f32 %v4157_v32, %v4159_v8 }
 0x657   :  { %1750 = vmax.xlane.f32.xlu0 %v1749_v44 }
 0x65f   :  { %1804 = vmax.xlane.f32.xlu0 %v1803_v13  ;;  %v1737_v13 = vmax.f32 %v4033_v16, %v4035_v54 }
 0x667   :  { %1747 = vmax.xlane.f32.xlu0 %v1746_v26 }
 0x66f   :  { %1801 = vmax.xlane.f32.xlu0 %v1800_v42 }
 0x677   :  { %1744 = vmax.xlane.f32.xlu0 %v1743_v43 }
 0x67f   :  { %1798 = vmax.xlane.f32.xlu0 %v1797_v47  ;;  %v1791_v47 = vmax.f32 %v4153_v62, %v4155_v2 }
 0x687   :  { %1741 = vmax.xlane.f32.xlu0 %v1740_v37 }
 0x68f   :  { %1795 = vmax.xlane.f32.xlu0 %v1794_v23 }
 0x692   :  { %v1817_v44 = vpop.xlane.xlu0 %1816 }
 0x697   :  { %1738 = vmax.xlane.f32.xlu0 %v1737_v13 }
 0x69a   :  { %v1760_v26 = vpop.xlane.xlu0 %1759 }
 0x69b   :  { %v1843_v42 = vsub.f32 %v4089_v21, %v1760_v26  ;;  %v1844_v43 = vsub.f32 %v4091_v31, %v1760_v26  ;;  %v1734_v21 = vmax.f32 %v4025_v18, %v4027_v7  ;;  %v1881_v31 = vsub.f32 %v4187_v40, %v1817_v44 }
 0x69c   :  { %v1788_v40 = vmax.f32 %v4149_v0, %v4151_v27 }
 0x69d   :  { %v1929_v56 = vmul.f32 1.442695, %v1843_v42  ;;  %v1931_v10 = vmul.f32 1.442695, %v1844_v43  ;;  %v1820_v42 = vpop.xlane.xlu1 %1819 }
 0x69f   :  { %2641 = vpow2.f32 %v1929_v56  ;;  %1792 = vmax.xlane.f32.xlu0 %v1791_v47  ;;  %v1882_v56 = vsub.f32 %v4189_v11, %v1817_v44  ;;  %v1883_v11 = vsub.f32 %v4195_v1, %v1820_v42  ;;  %v1884_v44 = vsub.f32 %v4197_v24, %v1820_v42 }
 0x6a0   :  { %2643 = vpow2.f32 %v1931_v10 }
 0x6a1   :  { %v2007_v10 = vmul.f32 1.442695, %v1882_v56 }
 0x6a2   :  { %v1814_v37 = vpop.xlane.xlu0 %1813 }
 0x6a3   :  { %v1879_v23 = vsub.f32 %v4181_v20, %v1814_v37  ;;  %v1880_v52 = vsub.f32 %v4183_v36, %v1814_v37  ;;  %v2005_v36 = vmul.f32 1.442695, %v1881_v31 }
 0x6a5   :  { %v4249_v3 = vpop.eup %2641  ;;  %v2001_v13 = vmul.f32 1.442695, %v1879_v23  ;;  %v2003_v26 = vmul.f32 1.442695, %v1880_v52  ;;  %v2009_v23 = vmul.f32 1.442695, %v1883_v11 }
 0x6a6   :  { %v4254_v2 = vpop.eup %2643 }
 0x6a7   :  { %2645 = vpow2.f32 %v2001_v13  ;;  %1735 = vmax.xlane.f32.xlu0 %v1734_v21  ;;  %v2046_v20 = vadd.f32 %v4254_v2, %v4249_v3  ;;  %v2011_v21 = vmul.f32 1.442695, %v1884_v44 }
 0x6a8   :  { %2647 = vpow2.f32 %v2003_v26 }
 0x6a9   :  { %2047 = vadd.xlane.f32.xlu1 %v2046_v20  ;;  %2649 = vpow2.f32 %v2005_v36  ;;  %v1731_v20 = vmax.f32 %v4017_v28, %v4019_v17 }
 0x6aa   :  { %v4259_v43 = vpop.xlane.xlu0 %1756  ;;  %2651 = vpow2.f32 %v2007_v10 }
 0x6ab   :  { %2653 = vpow2.f32 %v2009_v23 }
 0x6ac   :  { %2655 = vpow2.f32 %v2011_v21 }
 0x6ad   :  { %v4261_v47 = vpop.eup %2645 }
 0x6ae   :  { %4895 = vst [vmem:[#allocation65_spill] sm:$0xff] %v4261_v47  ;;  %v4266_v52 = vpop.eup %2647 }
 0x6af   :  { %4896 = vst [vmem:[#allocation62_spill] sm:$0xff] %v4266_v52  ;;  %1789 = vmax.xlane.f32.xlu0 %v1788_v40  ;;  %v2100_v37 = vadd.f32 %v4266_v52, %v4261_v47  ;;  %v4271_v13 = vpop.eup %2649 }
 0x6b0   :  { %v4275_v1 = vpop.eup %2651 }
 0x6b1   :  { %2101 = vadd.xlane.f32.xlu2 %v2100_v37  ;;  %4897 = vst [vmem:[#allocation63_spill] sm:$0xff] %v4275_v1  ;;  %v2103_v10 = vadd.f32 %v4275_v1, %v4271_v13  ;;  %v1785_v37 = vmax.f32 %v4145_v51, %v4147_v14 }
 0x6b2   :  { %v1811_v31 = vpop.xlane.xlu0 %1810 }
 0x6b3   :  { %v1877_v26 = vsub.f32 %v4177_v46, %v1811_v31  ;;  %v1878_v56 = vsub.f32 %v4179_v53, %v1811_v31  ;;  %v4281_v46 = vpop.eup %2653 }
 0x6b4   :  { %v4285_v11 = vpop.eup %2655 }
 0x6b5   :  { %v1997_v24 = vmul.f32 1.442695, %v1877_v26  ;;  %v1999_v36 = vmul.f32 1.442695, %v1878_v56 }
 0x6b7   :  { %2657 = vpow2.f32 %v1997_v24  ;;  %1732 = vmax.xlane.f32.xlu0 %v1731_v20 }
 0x6b8   :  { %2659 = vpow2.f32 %v1999_v36 }
 0x6b9   :  { %2104 = vadd.xlane.f32.xlu2 %v2103_v10  ;;  %v1728_v10 = vmax.f32 %v4009_v49, %v4011_v25 }
 0x6ba   :  { %v1754_v42 = vpop.xlane.xlu0 %1753 }
 0x6bb   :  { %v1839_v53 = vsub.f32 %v4073_v33, %v1754_v42  ;;  %v1840_v40 = vsub.f32 %v4075_v12, %v1754_v42  ;;  %v2106_v33 = vadd.f32 %v4285_v11, %v4281_v46  ;;  %v1769_v12 = vpop.xlane.xlu2 %1768 }
 0x6bc   :  { %v1849_v20 = vsub.f32 %v4109_v60, %v1769_v12  ;;  %v1850_v24 = vsub.f32 %v4111_v29, %v1769_v12 }
 0x6bd   :  { %v4287_v44 = vpop.eup %2657  ;;  %v1921_v23 = vmul.f32 1.442695, %v1839_v53  ;;  %v1923_v21 = vmul.f32 1.442695, %v1840_v40 }
 0x6be   :  { %4898 = vst [vmem:[#allocation60_spill] sm:$0xff] %v4287_v44  ;;  %v4291_v31 = vpop.eup %2659  ;;  %v1941_v53 = vmul.f32 1.442695, %v1849_v20 }
 0x6bf   :  { %4899 = vst [vmem:[#allocation61_spill] sm:$0xff] %v4291_v31  ;;  %2661 = vpow2.f32 %v1921_v23  ;;  %1786 = vmax.xlane.f32.xlu0 %v1785_v37  ;;  %v2097_v26 = vadd.f32 %v4291_v31, %v4287_v44  ;;  %v1943_v37 = vmul.f32 1.442695, %v1850_v24  ;;  %v4904_v31 = vld [vmem:[#allocation53_spill] sm:$0xff]  ;;  %v4905_v44 = vld [vmem:[#allocation52_spill] sm:$0xff] }
 0x6c0   :  { %2663 = vpow2.f32 %v1923_v21  ;;  %v1782_v21 = vmax.f32 %v4141_v41, %v4143_v22  ;;  %v1776_v52 = vmax.f32 %v4905_v44, %v4904_v31 }
 0x6c1   :  { %2098 = vadd.xlane.f32.xlu1 %v2097_v26  ;;  %2107 = vadd.xlane.f32.xlu2 %v2106_v33  ;;  %2665 = vpow2.f32 %v1941_v53 }
 0x6c2   :  { %v4297_v56 = vpop.xlane.xlu0 %1807  ;;  %2667 = vpow2.f32 %v1943_v37 }
 0x6c5   :  { %v4301_v36 = vpop.eup %2661 }
 0x6c6   :  { %v4305_v42 = vpop.eup %2663 }
 0x6c7   :  { %1729 = vmax.xlane.f32.xlu0 %v1728_v10  ;;  %v2040_v40 = vadd.f32 %v4305_v42, %v4301_v36  ;;  %v4313_v12 = vpop.eup %2665 }
 0x6c8   :  { %v4315_v20 = vpop.eup %2667 }
 0x6c9   :  { %2041 = vadd.xlane.f32.xlu2 %v2040_v40  ;;  %v2055_v37 = vadd.f32 %v4315_v20, %v4313_v12 }
 0x6ca   :  { %v1751_v23 = vpop.xlane.xlu0 %1750 }
 0x6cb   :  { %v1837_v60 = vsub.f32 %v4065_v4, %v1751_v23  ;;  %v1838_v29 = vsub.f32 %v4067_v57, %v1751_v23 }
 0x6cd   :  { %v1917_v26 = vmul.f32 1.442695, %v1837_v60  ;;  %v1919_v33 = vmul.f32 1.442695, %v1838_v29 }
 0x6cf   :  { %2669 = vpow2.f32 %v1917_v26  ;;  %1783 = vmax.xlane.f32.xlu0 %v1782_v21 }
 0x6d0   :  { %2671 = vpow2.f32 %v1919_v33 }
 0x6d2   :  { %v1805_v24 = vpop.xlane.xlu0 %1804 }
 0x6d3   :  { %v1873_v10 = vsub.f32 %v4169_v5, %v1805_v24  ;;  %v1874_v4 = vsub.f32 %v4171_v34, %v1805_v24  ;;  %v1779_v34 = vmax.f32 %v4137_v6, %v4139_v19  ;;  %v4901_v24 = vld [vmem:[#allocation55_spill] sm:$0xff] }
 0x6d5   :  { %v4319_v53 = vpop.eup %2669  ;;  %v1989_v57 = vmul.f32 1.442695, %v1873_v10  ;;  %v1991_v40 = vmul.f32 1.442695, %v1874_v4  ;;  %v4902_v10 = vld [vmem:[#allocation33_spill] sm:$0xff] }
 0x6d6   :  { %v4323_v23 = vpop.eup %2671  ;;  %v1851_v4 = vsub.f32 %v4902_v10, %v4901_v24 }
 0x6d7   :  { %2673 = vpow2.f32 %v1989_v57  ;;  %2056 = vadd.xlane.f32.xlu0 %v2055_v37  ;;  %v2037_v60 = vadd.f32 %v4323_v23, %v4319_v53  ;;  %v4903_v37 = vld [vmem:[#allocation51_spill] sm:$0xff] }
 0x6d8   :  { %2675 = vpow2.f32 %v1991_v40  ;;  %v1945_v1 = vmul.f32 1.442695, %v1851_v4  ;;  %v4906_v4 = vld [vmem:[#allocation36_spill] sm:$0xff] }
 0x6d9   :  { %2038 = vadd.xlane.f32.xlu1 %v2037_v60  ;;  %v1852_v60 = vsub.f32 %v4903_v37, %v4901_v24  ;;  %v1842_v24 = vsub.f32 %v4083_v39, %v4259_v43 }
 0x6da   :  { %v4327_v29 = vpop.xlane.xlu0 %1747 }
 0x6dd   :  { %v4329_v5 = vpop.eup %2673 }
 0x6de   :  { %v4333_v21 = vpop.eup %2675 }
 0x6df   :  { %4900 = vst [vmem:[#allocation2_spill] sm:$0xff] %v4333_v21  ;;  %1780 = vmax.xlane.f32.xlu0 %v1779_v34  ;;  %v2091_v26 = vadd.f32 %v4333_v21, %v4329_v5 }
 0x6e1   :  { %2092 = vadd.xlane.f32.xlu2 %v2091_v26  ;;  %v1947_v26 = vmul.f32 1.442695, %v1852_v60  ;;  %v1876_v60 = vsub.f32 %v4175_v38, %v4297_v56  ;;  %v1835_v38 = vsub.f32 %v4057_v58, %v4327_v29 }
 0x6e2   :  { %v1802_v33 = vpop.xlane.xlu0 %1801 }
 0x6e3   :  { %v1871_v57 = vsub.f32 %v4165_v30, %v1802_v33  ;;  %v1872_v40 = vsub.f32 %v4167_v50, %v1802_v33  ;;  %v1841_v30 = vsub.f32 %v4081_v15, %v4259_v43 }
 0x6e5   :  { %v1985_v47 = vmul.f32 1.442695, %v1871_v57  ;;  %v1987_v34 = vmul.f32 1.442695, %v1872_v40 }
 0x6e7   :  { %2677 = vpow2.f32 %v1985_v47  ;;  %1777 = vmax.xlane.f32.xlu0 %v1776_v52  ;;  %v4907_v47 = vld [vmem:[#allocation35_spill] sm:$0xff] }
 0x6e8   :  { %2679 = vpow2.f32 %v1987_v34  ;;  %v1773_v52 = vmax.f32 %v4907_v47, %v4906_v4 }
 0x6e9   :  { %2681 = vpow2.f32 %v1945_v1  ;;  %v1925_v1 = vmul.f32 1.442695, %v1841_v30 }
 0x6ea   :  { %v1745_v21 = vpop.xlane.xlu0 %1744  ;;  %2683 = vpow2.f32 %v1947_v26 }
 0x6eb   :  { %v1833_v50 = vsub.f32 %v4049_v9, %v1745_v21  ;;  %v1834_v33 = vsub.f32 %v4051_v59, %v1745_v21  ;;  %v1927_v59 = vmul.f32 1.442695, %v1842_v24  ;;  %v1875_v21 = vsub.f32 %v4173_v61, %v4297_v56 }
 0x6ec   :  { %v1995_v24 = vmul.f32 1.442695, %v1876_v60  ;;  %v1913_v60 = vmul.f32 1.442695, %v1835_v38 }
 0x6ed   :  { %v4351_v10 = vpop.eup %2677  ;;  %v1909_v57 = vmul.f32 1.442695, %v1833_v50  ;;  %v1911_v40 = vmul.f32 1.442695, %v1834_v33  ;;  %v1993_v50 = vmul.f32 1.442695, %v1875_v21 }
 0x6ee   :  { %v4355_v37 = vpop.eup %2679 }
 0x6ef   :  { %2685 = vpow2.f32 %v1909_v57  ;;  %1774 = vmax.xlane.f32.xlu0 %v1773_v52  ;;  %v2088_v9 = vadd.f32 %v4355_v37, %v4351_v10  ;;  %v4359_v15 = vpop.eup %2681 }
 0x6f0   :  { %2687 = vpow2.f32 %v1911_v40  ;;  %v4361_v39 = vpop.eup %2683 }
 0x6f1   :  { %2089 = vadd.xlane.f32.xlu1 %v2088_v9  ;;  %2689 = vpow2.f32 %v1925_v1  ;;  %v2058_v26 = vadd.f32 %v4361_v39, %v4359_v15  ;;  %v1836_v1 = vsub.f32 %v4059_v48, %v4327_v29 }
 0x6f2   :  { %v1799_v43 = vpop.xlane.xlu0 %1798  ;;  %2691 = vpow2.f32 %v1927_v59 }
 0x6f3   :  { %2693 = vpow2.f32 %v1993_v50 }
 0x6f4   :  { %2695 = vpow2.f32 %v1995_v24 }
 0x6f5   :  { %v4367_v34 = vpop.eup %2685 }
 0x6f6   :  { %v4371_v30 = vpop.eup %2687 }
 0x6f7   :  { %2059 = vadd.xlane.f32.xlu0 %v2058_v26  ;;  %v2031_v33 = vadd.f32 %v4371_v30, %v4367_v34  ;;  %v4375_v52 = vpop.eup %2689  ;;  %v1915_v26 = vmul.f32 1.442695, %v1836_v1 }
 0x6f8   :  { %v4377_v61 = vpop.eup %2691 }
 0x6f9   :  { %2032 = vadd.xlane.f32.xlu2 %v2031_v33  ;;  %v2043_v21 = vadd.f32 %v4377_v61, %v4375_v52  ;;  %v4387_v50 = vpop.eup %2693  ;;  %v1870_v33 = vsub.f32 %v4163_v63, %v1799_v43 }
 0x6fa   :  { %v1742_v57 = vpop.xlane.xlu0 %1741  ;;  %v4389_v58 = vpop.eup %2695 }
 0x6fb   :  { %v1831_v56 = vsub.f32 %v4041_v45, %v1742_v57  ;;  %v1832_v40 = vsub.f32 %v4043_v35, %v1742_v57  ;;  %v1869_v35 = vsub.f32 %v4161_v55, %v1799_v43  ;;  %v1983_v55 = vmul.f32 1.442695, %v1870_v33 }
 0x6fd   :  { %v1905_v9 = vmul.f32 1.442695, %v1831_v56  ;;  %v1907_v59 = vmul.f32 1.442695, %v1832_v40  ;;  %v2094_v56 = vadd.f32 %v4389_v58, %v4387_v50  ;;  %v1981_v1 = vmul.f32 1.442695, %v1869_v35 }
 0x6ff   :  { %2697 = vpow2.f32 %v1905_v9  ;;  %2044 = vadd.xlane.f32.xlu0 %v2043_v21 }
 0x700   :  { %2699 = vpow2.f32 %v1907_v59 }
 0x701   :  { %2701 = vpow2.f32 %v1913_v60 }
 0x702   :  { %v1796_v45 = vpop.xlane.xlu0 %1795  ;;  %2703 = vpow2.f32 %v1915_v26 }
 0x703   :  { %v1867_v48 = vsub.f32 %v4157_v32, %v1796_v45  ;;  %v1868_v29 = vsub.f32 %v4159_v8, %v1796_v45 }
 0x705   :  { %v4395_v24 = vpop.eup %2697  ;;  %v1977_v57 = vmul.f32 1.442695, %v1867_v48  ;;  %v1979_v38 = vmul.f32 1.442695, %v1868_v29 }
 0x706   :  { %v4399_v40 = vpop.eup %2699 }
 0x707   :  { %2705 = vpow2.f32 %v1977_v57  ;;  %2095 = vadd.xlane.f32.xlu0 %v2094_v56  ;;  %v2028_v32 = vadd.f32 %v4399_v40, %v4395_v24  ;;  %v4403_v8 = vpop.eup %2701  ;;  %v4908_v57 = vld [vmem:[#allocation54_spill] sm:$0xff] }
 0x708   :  { %2707 = vpow2.f32 %v1979_v38  ;;  %v4405_v63 = vpop.eup %2703 }
 0x709   :  { %2029 = vadd.xlane.f32.xlu1 %v2028_v32  ;;  %2709 = vpow2.f32 %v1981_v1  ;;  %v2034_v60 = vadd.f32 %v4405_v63, %v4403_v8 }
 0x70a   :  { %v1739_v43 = vpop.xlane.xlu0 %1738  ;;  %2711 = vpow2.f32 %v1983_v55 }
 0x70b   :  { %v1829_v9 = vsub.f32 %v4033_v16, %v1739_v43  ;;  %v1830_v59 = vsub.f32 %v4035_v54, %v1739_v43 }
 0x70d   :  { %v4409_v21 = vpop.eup %2705  ;;  %v1901_v45 = vmul.f32 1.442695, %v1829_v9  ;;  %v1903_v48 = vmul.f32 1.442695, %v1830_v59 }
 0x70e   :  { %v4413_v26 = vpop.eup %2707 }
 0x70f   :  { %2035 = vadd.xlane.f32.xlu0 %v2034_v60  ;;  %v2082_v35 = vadd.f32 %v4413_v26, %v4409_v21  ;;  %v4417_v29 = vpop.eup %2709  ;;  %2713 = vpow2.f32 %v1901_v45 }
 0x710   :  { %v4419_v16 = vpop.eup %2711  ;;  %2715 = vpow2.f32 %v1903_v48 }
 0x711   :  { %2083 = vadd.xlane.f32.xlu2 %v2082_v35  ;;  %v2085_v32 = vadd.f32 %v4419_v16, %v4417_v29 }
 0x712   :  { %v1793_v33 = vpop.xlane.xlu0 %1792 }
 0x713   :  { %v1865_v54 = vsub.f32 %v4153_v62, %v1793_v33  ;;  %v1866_v38 = vsub.f32 %v4908_v57, %v1793_v33 }
 0x715   :  { %v1973_v56 = vmul.f32 1.442695, %v1865_v54  ;;  %v1975_v1 = vmul.f32 1.442695, %v1866_v38  ;;  %v4425_v55 = vpop.eup %2713 }
 0x716   :  { %v4427_v43 = vpop.eup %2715 }
 0x717   :  { %2717 = vpow2.f32 %v1973_v56  ;;  %2086 = vadd.xlane.f32.xlu0 %v2085_v32  ;;  %v2025_v48 = vadd.f32 %v4427_v43, %v4425_v55 }
 0x718   :  { %2719 = vpow2.f32 %v1975_v1 }
 0x71a   :  { %v1736_v9 = vpop.xlane.xlu0 %1735 }
 0x71b   :  { %v1827_v59 = vsub.f32 %v4025_v18, %v1736_v9  ;;  %v1828_v62 = vsub.f32 %v4027_v7, %v1736_v9 }
 0x71d   :  { %v4431_v60 = vpop.eup %2717  ;;  %v1897_v45 = vmul.f32 1.442695, %v1827_v59  ;;  %v1899_v35 = vmul.f32 1.442695, %v1828_v62 }
 0x71e   :  { %v4435_v33 = vpop.eup %2719 }
 0x71f   :  { %2721 = vpow2.f32 %v1897_v45  ;;  %2026 = vadd.xlane.f32.xlu0 %v2025_v48  ;;  %v2079_v54 = vadd.f32 %v4435_v33, %v4431_v60 }
 0x720   :  { %2723 = vpow2.f32 %v1899_v35 }
 0x721   :  { %2080 = vadd.xlane.f32.xlu1 %v2079_v54 }
 0x722   :  { %v1790_v57 = vpop.xlane.xlu0 %1789 }
 0x723   :  { %v1863_v18 = vsub.f32 %v4149_v0, %v1790_v57  ;;  %v1864_v7 = vsub.f32 %v4151_v27, %v1790_v57  ;;  %v1727_v57 = vpop.xlane.xlu2 %1726 }
 0x725   :  { %v4441_v38 = vpop.eup %2721  ;;  %v1969_v56 = vmul.f32 1.442695, %v1863_v18  ;;  %v1971_v1 = vmul.f32 1.442695, %v1864_v7 }
 0x726   :  { %v4443_v32 = vpop.eup %2723 }
 0x727   :  { %2725 = vpow2.f32 %v1969_v56  ;;  %v2022_v9 = vadd.f32 %v4443_v32, %v4441_v38 }
 0x728   :  { %2727 = vpow2.f32 %v1971_v1 }
 0x729   :  { %2023 = vadd.xlane.f32.xlu2 %v2022_v9 }
 0x72a   :  { %v1733_v59 = vpop.xlane.xlu0 %1732 }
 0x72b   :  { %v1825_v62 = vsub.f32 %v4017_v28, %v1733_v59  ;;  %v1826_v45 = vsub.f32 %v4019_v17, %v1733_v59  ;;  %v4911_v17 = vld [vmem:[#allocation50_spill] sm:$0xff] }
 0x72c   :  { %v1821_v1 = vsub.f32 %v4911_v17, %v1727_v57 }
 0x72d   :  { %v4449_v0 = vpop.eup %2725  ;;  %v1893_v27 = vmul.f32 1.442695, %v1825_v62  ;;  %v1895_v35 = vmul.f32 1.442695, %v1826_v45  ;;  %v4912_v45 = vld [vmem:[#allocation32_spill] sm:$0xff] }
 0x72e   :  { %4909 = vst [vmem:[#allocation9_spill] sm:$0xff] %v4449_v0  ;;  %v4451_v48 = vpop.eup %2727 }
 0x72f   :  { %4910 = vst [vmem:[#allocation10_spill] sm:$0xff] %v4451_v48  ;;  %2729 = vpow2.f32 %v1893_v27  ;;  %v2076_v54 = vadd.f32 %v4451_v48, %v4449_v0  ;;  %v1822_v27 = vsub.f32 %v4912_v45, %v1727_v57 }
 0x730   :  { %2731 = vpow2.f32 %v1895_v35 }
 0x731   :  { %2077 = vadd.xlane.f32.xlu0 %v2076_v54  ;;  %v1885_v54 = vmul.f32 1.442695, %v1821_v1 }
 0x732   :  { %v1787_v18 = vpop.xlane.xlu0 %1786 }
 0x733   :  { %v1861_v7 = vsub.f32 %v4145_v51, %v1787_v18  ;;  %v1862_v28 = vsub.f32 %v4147_v14, %v1787_v18  ;;  %v1887_v51 = vmul.f32 1.442695, %v1822_v27 }
 0x735   :  { %v4457_v56 = vpop.eup %2729  ;;  %v1965_v9 = vmul.f32 1.442695, %v1861_v7  ;;  %v1967_v59 = vmul.f32 1.442695, %v1862_v28 }
 0x736   :  { %v4460_v62 = vpop.eup %2731 }
 0x737   :  { %2733 = vpow2.f32 %v1965_v9  ;;  %v2019_v35 = vadd.f32 %v4460_v62, %v4457_v56 }
 0x738   :  { %2735 = vpow2.f32 %v1967_v59 }
 0x739   :  { %2020 = vadd.xlane.f32.xlu1 %v2019_v35  ;;  %2737 = vpow2.f32 %v1885_v54 }
 0x73a   :  { %v1730_v48 = vpop.xlane.xlu0 %1729  ;;  %2739 = vpow2.f32 %v1887_v51 }
 0x73b   :  { %v1823_v14 = vsub.f32 %v4009_v49, %v1730_v48  ;;  %v1824_v18 = vsub.f32 %v4011_v25, %v1730_v48 }
 0x73d   :  { %v4467_v17 = vpop.eup %2733  ;;  %v1889_v7 = vmul.f32 1.442695, %v1823_v14  ;;  %v1891_v28 = vmul.f32 1.442695, %v1824_v18 }
 0x73e   :  { %v4469_v0 = vpop.eup %2735 }
 0x73f   :  { %4913 = vst [vmem:[#allocation6_spill] sm:$0xff] %v4469_v0  ;;  %2741 = vpow2.f32 %v1889_v7  ;;  %v2073_v57 = vadd.f32 %v4469_v0, %v4467_v17  ;;  %v4473_v9 = vpop.eup %2737 }
 0x740   :  { %2743 = vpow2.f32 %v1891_v28  ;;  %v4477_v48 = vpop.eup %2739 }
 0x741   :  { %2074 = vadd.xlane.f32.xlu2 %v2073_v57  ;;  %v2013_v51 = vadd.f32 %v4477_v48, %v4473_v9 }
 0x742   :  { %v1784_v1 = vpop.xlane.xlu0 %1783 }
 0x743   :  { %v1859_v49 = vsub.f32 %v4141_v41, %v1784_v1  ;;  %v1860_v25 = vsub.f32 %v4143_v22, %v1784_v1 }
 0x745   :  { %v4479_v59 = vpop.eup %2741  ;;  %v1961_v45 = vmul.f32 1.442695, %v1859_v49  ;;  %v1963_v27 = vmul.f32 1.442695, %v1860_v25 }
 0x746   :  { %v4481_v35 = vpop.eup %2743 }
 0x747   :  { %2745 = vpow2.f32 %v1961_v45  ;;  %v2016_v54 = vadd.f32 %v4481_v35, %v4479_v59 }
 0x748   :  { %2747 = vpow2.f32 %v1963_v27 }
 0x749   :  { %2017 = vadd.xlane.f32.xlu0 %v2016_v54  ;;  %2014 = vadd.xlane.f32.xlu2 %v2013_v51  ;;  %v2054_v54 = vpop.xlane.xlu1 %2053  ;;  %v4497_v51 = vpop.xlane.xlu2 %2101 }
 0x74a   :  { %v2057_v41 = vpop.xlane.xlu0 %2056 }
 0x74d   :  { %v4487_v22 = vpop.eup %2745 }
 0x74e   :  { %4914 = vst [vmem:[#allocation7_spill] sm:$0xff] %v4487_v22  ;;  %v4489_v14 = vpop.eup %2747 }
 0x74f   :  { %4915 = vst [vmem:[#allocation68_spill] sm:$0xff] %v4489_v14  ;;  %v2070_v18 = vadd.f32 %v4489_v14, %v4487_v22 }
 0x751   :  { %2071 = vadd.xlane.f32.xlu1 %v2070_v18 }
 0x752   :  { %v1781_v7 = vpop.xlane.xlu0 %1780 }
 0x753   :  { %v1857_v28 = vsub.f32 %v4137_v6, %v1781_v7  ;;  %v1858_v57 = vsub.f32 %v4139_v19, %v1781_v7 }
 0x755   :  { %v1957_v1 = vmul.f32 1.442695, %v1857_v28  ;;  %v1959_v49 = vmul.f32 1.442695, %v1858_v57 }
 0x757   :  { %2749 = vpow2.f32 %v1957_v1 }
 0x758   :  { %2751 = vpow2.f32 %v1959_v49  ;;  %v2051_v49 = vpop.xlane.xlu1 %2050 }
 0x75a   :  { %v1778_v25 = vpop.xlane.xlu0 %1777 }
 0x75b   :  { %v1855_v45 = vsub.f32 %v4905_v44, %v1778_v25  ;;  %v1856_v27 = vsub.f32 %v4904_v31, %v1778_v25  ;;  %v4511_v25 = vpop.xlane.xlu2 %2104 }
 0x75d   :  { %v4499_v0 = vpop.eup %2749  ;;  %v1953_v18 = vmul.f32 1.442695, %v1855_v45  ;;  %v1955_v14 = vmul.f32 1.442695, %v1856_v27 }
 0x75e   :  { %v4501_v22 = vpop.eup %2751 }
 0x75f   :  { %2753 = vpow2.f32 %v1953_v18  ;;  %v2067_v6 = vadd.f32 %v4501_v22, %v4499_v0 }
 0x760   :  { %2755 = vpow2.f32 %v1955_v14  ;;  %v2048_v27 = vpop.xlane.xlu1 %2047 }
 0x761   :  { %2068 = vadd.xlane.f32.xlu0 %v2067_v6 }
 0x762   :  { %v1775_v19 = vpop.xlane.xlu0 %1774 }
 0x763   :  { %v1853_v44 = vsub.f32 %v4907_v47, %v1775_v19  ;;  %v1854_v31 = vsub.f32 %v4906_v4, %v1775_v19  ;;  %v4521_v6 = vpop.xlane.xlu2 %2107 }
 0x765   :  { %v4507_v7 = vpop.eup %2753  ;;  %v1949_v28 = vmul.f32 1.442695, %v1853_v44  ;;  %v1951_v57 = vmul.f32 1.442695, %v1854_v31 }
 0x766   :  { %v4509_v1 = vpop.eup %2755 }
 0x767   :  { %4916 = vst [vmem:[#allocation69_spill] sm:$0xff] %v4509_v1  ;;  %2757 = vpow2.f32 %v1949_v28  ;;  %v2064_v45 = vadd.f32 %v4509_v1, %v4507_v7  ;;  %v4922_v1 = vld [vmem:[#allocation64_spill] sm:$0xff] }
 0x768   :  { %2759 = vpow2.f32 %v1951_v57 }
 0x769   :  { %2065 = vadd.xlane.f32.xlu1 %v2064_v45 }
 0x76a   :  { %v2060_v14 = vpop.xlane.xlu0 %2059 }
 0x76b   :  { %2761 = vrcp.f32 %v2060_v14 }
 0x76c   :  { %2763 = vrcp.f32 %v2057_v41  ;;  %v4525_v41 = vpop.xlane.xlu1 %2098 }
 0x76d   :  { %v4515_v47 = vpop.eup %2757  ;;  %2765 = vrcp.f32 %v2054_v54  ;;  %v2042_v54 = vpop.xlane.xlu2 %2041 }
 0x76e   :  { %4917 = vst [vmem:[#allocation66_spill] sm:$0xff] %v4515_v47  ;;  %v4517_v4 = vpop.eup %2759  ;;  %2767 = vrcp.f32 %v2051_v49 }
 0x76f   :  { %4918 = vst [vmem:[#allocation67_spill] sm:$0xff] %v4517_v4  ;;  %v2061_v18 = vadd.f32 %v4517_v4, %v4515_v47  ;;  %2769 = vrcp.f32 %v2048_v27 }
 0x771   :  { %v2762_v19 = vpop.eup %2761  ;;  %2062 = vadd.xlane.f32.xlu2 %v2061_v18 }
 0x772   :  { %v2045_v44 = vpop.xlane.xlu0 %2044  ;;  %v2171_v31 = vmul.f32 %v2762_v19, %v4359_v15  ;;  %v2172_v28 = vmul.f32 %v2762_v19, %v4361_v39  ;;  %v2764_v57 = vpop.eup %2763  ;;  %v4919_v15 = vld [vmem:[#allocation49_spill] sm:$0xff]  ;;  %v4920_v39 = vld [vmem:[#allocation16_spill] sm:$0xff] }
 0x773   :  { %v2169_v45 = vmul.f32 %v2764_v57, %v4313_v12  ;;  %v2170_v14 = vmul.f32 %v2764_v57, %v4315_v20  ;;  %v2766_v4 = vpop.eup %2765  ;;  %2771 = vrcp.f32 %v2045_v44 }
 0x774   :  { %2205 = vmatpush.xpose.msrb.mxu0 %v2171_v31  ;;  %2225 = vmatpush.xpose.msrb.mxu1 %v2172_v28  ;;  %v2167_v47 = vmul.f32 %v2766_v4, %v4919_v15  ;;  %v2168_v19 = vmul.f32 %v2766_v4, %v4920_v39  ;;  %v2768_v31 = vpop.eup %2767  ;;  %v2039_v49 = vpop.xlane.xlu1 %2038  ;;  %v4921_v28 = vld [vmem:[#allocation17_spill] sm:$0xff]  ;;  %2773 = vrcp.f32 %v2042_v54 }
 0x775   :  { %v2165_v12 = vmul.f32 %v2768_v31, %v4921_v28  ;;  %v2166_v20 = vmul.f32 %v2768_v31, %v4922_v1  ;;  %v2770_v57 = vpop.eup %2769  ;;  %v4535_v27 = vpop.xlane.xlu2 %2092  ;;  %2775 = vrcp.f32 %v2039_v49 }
 0x776   :  { %v2164_v4 = vmul.f32 %v2770_v57, %v4254_v2 }
 0x778   :  { %2206 = vmatpush.xpose.msrb.mxu0 %v2169_v45  ;;  %2226 = vmatpush.xpose.msrb.mxu1 %v2170_v14  ;;  %v2163_v14 = vmul.f32 %v2770_v57, %v4249_v3 }
 0x779   :  { %v2772_v15 = vpop.eup %2771 }
 0x77a   :  { %v4529_v18 = vpop.xlane.xlu0 %2095  ;;  %v2161_v44 = vmul.f32 %v2772_v15, %v4375_v52  ;;  %v2162_v1 = vmul.f32 %v2772_v15, %v4377_v61  ;;  %v2774_v39 = vpop.eup %2773 }
 0x77b   :  { %v2159_v3 = vmul.f32 %v2774_v39, %v4301_v36  ;;  %v2160_v2 = vmul.f32 %v2774_v39, %v4305_v42  ;;  %v2776_v31 = vpop.eup %2775 }
 0x77c   :  { %2207 = vmatpush.xpose.msrb.mxu0 %v2167_v47  ;;  %2227 = vmatpush.xpose.msrb.mxu1 %v2168_v19  ;;  %v4539_v47 = vpop.xlane.xlu1 %2089  ;;  %v2157_v52 = vmul.f32 %v2776_v31, %v4319_v53  ;;  %v2158_v61 = vmul.f32 %v2776_v31, %v4323_v23 }
 0x77d   :  { %v2033_v54 = vpop.xlane.xlu2 %2032 }
 0x780   :  { %2208 = vmatpush.xpose.msrb.mxu0 %v2165_v12  ;;  %2228 = vmatpush.xpose.msrb.mxu1 %v2166_v20 }
 0x782   :  { %v2036_v45 = vpop.xlane.xlu0 %2035 }
 0x783   :  { %2777 = vrcp.f32 %v2036_v45 }
 0x784   :  { %2209 = vmatpush.xpose.msrb.mxu0 %v2163_v14  ;;  %2229 = vmatpush.xpose.msrb.mxu1 %v2164_v4  ;;  %2779 = vrcp.f32 %v2033_v54  ;;  %v2030_v49 = vpop.xlane.xlu1 %2029 }
 0x785   :  { %2781 = vrcp.f32 %v2030_v49  ;;  %v4551_v42 = vpop.xlane.xlu2 %2083 }
 0x788   :  { %2210 = vmatpush.xpose.msrb.mxu0 %v2161_v44  ;;  %2230 = vmatpush.xpose.msrb.mxu1 %v2162_v1 }
 0x789   :  { %v2778_v28 = vpop.eup %2777 }
 0x78a   :  { %v4543_v19 = vpop.xlane.xlu0 %2086  ;;  %v2155_v20 = vmul.f32 %v2778_v28, %v4403_v8  ;;  %v2156_v36 = vmul.f32 %v2778_v28, %v4405_v63  ;;  %v2780_v57 = vpop.eup %2779 }
 0x78b   :  { %v2153_v45 = vmul.f32 %v2780_v57, %v4367_v34  ;;  %v2154_v53 = vmul.f32 %v2780_v57, %v4371_v30  ;;  %v2782_v23 = vpop.eup %2781 }
 0x78c   :  { %2211 = vmatpush.xpose.msrb.mxu0 %v2159_v3  ;;  %2231 = vmatpush.xpose.msrb.mxu1 %v2160_v2  ;;  %v2151_v14 = vmul.f32 %v2782_v23, %v4395_v24  ;;  %v2152_v4 = vmul.f32 %v2782_v23, %v4399_v40 }
 0x790   :  { %2212 = vmatpush.xpose.msrb.mxu0 %v2157_v52  ;;  %2232 = vmatpush.xpose.msrb.mxu1 %v2158_v61 }
 0x792   :  { %v2027_v12 = vpop.xlane.xlu0 %2026 }
 0x793   :  { %2783 = vrcp.f32 %v2027_v12 }
 0x794   :  { %2213 = vmatpush.xpose.msrb.mxu0 %v2155_v20  ;;  %2233 = vmatpush.xpose.msrb.mxu1 %v2156_v36  ;;  %v4559_v30 = vpop.xlane.xlu1 %2080  ;;  %v4925_v20 = vld [vmem:[#allocation12_spill] sm:$0xff] }
 0x798   :  { %2214 = vmatpush.xpose.msrb.mxu0 %v2153_v45  ;;  %2234 = vmatpush.xpose.msrb.mxu1 %v2154_v53  ;;  %v4928_v45 = vld [vmem:[#allocation62_spill] sm:$0xff] }
 0x799   :  { %v2784_v8 = vpop.eup %2783 }
 0x79a   :  { %v2149_v63 = vmul.f32 %v2784_v8, %v4425_v55  ;;  %v2150_v44 = vmul.f32 %v2784_v8, %v4427_v43 }
 0x79c   :  { %v2024_v15 = vpop.xlane.xlu2 %2023  ;;  %2215 = vmatpush.xpose.msrb.mxu0 %v2151_v14  ;;  %2235 = vmatpush.xpose.msrb.mxu1 %v2152_v4  ;;  %v4930_v4 = vld [vmem:[#allocation61_spill] sm:$0xff] }
 0x79d   :  { %2785 = vrcp.f32 %v2024_v15 }
 0x7a0   :  { %2216 = vmatpush.xpose.msrb.mxu0 %v2149_v63  ;;  %2236 = vmatpush.xpose.msrb.mxu1 %v2150_v44  ;;  %v4931_v44 = vld [vmem:[#allocation2_spill] sm:$0xff] }
 0x7a3   :  { %v2786_v34 = vpop.eup %2785 }
 0x7a4   :  { %v2147_v1 = vmul.f32 %v2786_v34, %v4441_v38  ;;  %v2148_v24 = vmul.f32 %v2786_v34, %v4443_v32  ;;  %v4563_v54 = vpop.xlane.xlu0 %2077 }
 0x7a6   :  { %2217 = vmatpush.xpose.msrb.mxu0 %v2147_v1  ;;  %2237 = vmatpush.xpose.msrb.mxu1 %v2148_v24 }
 0x7ac   :  { %v2021_v40 = vpop.xlane.xlu1 %2020 }
 0x7ad   :  { %2787 = vrcp.f32 %v2021_v40 }
 0x7b3   :  { %v2788_v39 = vpop.eup %2787 }
 0x7b4   :  { %v4565_v3 = vpop.xlane.xlu2 %2074  ;;  %v2145_v55 = vmul.f32 %v2788_v39, %v4457_v56  ;;  %v2146_v43 = vmul.f32 %v2788_v39, %v4460_v62 }
 0x7b6   :  { %2218 = vmatpush.xpose.msrb.mxu0 %v2145_v55  ;;  %2238 = vmatpush.xpose.msrb.mxu1 %v2146_v43 }
 0x7bc   :  { %v2018_v2 = vpop.xlane.xlu0 %2017  ;;  %v2015_v31 = vpop.xlane.xlu2 %2014 }
 0x7bd   :  { %2789 = vrcp.f32 %v2018_v2 }
 0x7be   :  { %2791 = vrcp.f32 %v2015_v31  ;;  %v4934_v31 = vld [vmem:[#allocation6_spill] sm:$0xff] }
 0x7bf   :  { %2793 = vrcp.f32 %v4521_v6 }
 0x7c0   :  { %2795 = vrcp.f32 %v4511_v25  ;;  %v4924_v25 = vld [vmem:[#allocation11_spill] sm:$0xff] }
 0x7c1   :  { %2797 = vrcp.f32 %v4497_v51  ;;  %v4927_v51 = vld [vmem:[#allocation65_spill] sm:$0xff] }
 0x7c2   :  { %2799 = vrcp.f32 %v4525_v41  ;;  %v4929_v41 = vld [vmem:[#allocation60_spill] sm:$0xff] }
 0x7c3   :  { %v2790_v38 = vpop.eup %2789  ;;  %2801 = vrcp.f32 %v4529_v18 }
 0x7c4   :  { %v2143_v32 = vmul.f32 %v2790_v38, %v4479_v59  ;;  %v2144_v49 = vmul.f32 %v2790_v38, %v4481_v35  ;;  %v2792_v52 = vpop.eup %2791  ;;  %v4923_v59 = vld [vmem:[#allocation59_spill] sm:$0xff]  ;;  %2803 = vrcp.f32 %v4535_v27 }
 0x7c5   :  { %v2794_v61 = vpop.eup %2793  ;;  %v2141_v56 = vmul.f32 %v2792_v52, %v4473_v9  ;;  %v2142_v62 = vmul.f32 %v2792_v52, %v4477_v48  ;;  %v4580_v35 = vadd.f32 %v4924_v25, %v4923_v59  ;;  %v4584_v36 = vadd.f32 %v4925_v20, %v4923_v59  ;;  %v4936_v52 = vld [vmem:[#allocation68_spill] sm:$0xff]  ;;  %v4938_v20 = vld [vmem:[#allocation66_spill] sm:$0xff] }
 0x7c6   :  { %2219 = vmatpush.xpose.msrb.mxu0 %v2143_v32  ;;  %2239 = vmatpush.xpose.msrb.mxu1 %v2144_v49  ;;  %v2203_v28 = vmul.f32 %v2794_v61, %v4281_v46  ;;  %v2204_v6 = vmul.f32 %v2794_v61, %v4285_v11  ;;  %v2796_v12 = vpop.eup %2795  ;;  %v4926_v11 = vld [vmem:[#allocation63_spill] sm:$0xff]  ;;  %2805 = vrcp.f32 %v4539_v47 }
 0x7c7   :  { %v2201_v46 = vmul.f32 %v2796_v12, %v4271_v13  ;;  %v2202_v9 = vmul.f32 %v2796_v12, %v4926_v11  ;;  %v2798_v48 = vpop.eup %2797  ;;  %2807 = vrcp.f32 %v4543_v19  ;;  %v4935_v32 = vld [vmem:[#allocation7_spill] sm:$0xff]  ;;  %v4937_v12 = vld [vmem:[#allocation69_spill] sm:$0xff] }
 0x7c8   :  { %v2199_v57 = vmul.f32 %v2798_v48, %v4927_v51  ;;  %v2200_v53 = vmul.f32 %v2798_v48, %v4928_v45  ;;  %v2800_v23 = vpop.eup %2799  ;;  %2809 = vrcp.f32 %v4551_v42  ;;  %v4939_v11 = vld [vmem:[#allocation67_spill] sm:$0xff] }
 0x7c9   :  { %v2197_v14 = vmul.f32 %v2800_v23, %v4929_v41  ;;  %v2198_v13 = vmul.f32 %v2800_v23, %v4930_v4  ;;  %v2802_v8 = vpop.eup %2801  ;;  %2811 = vrcp.f32 %v4559_v30 }
 0x7ca   :  { %2220 = vmatpush.xpose.msrb.mxu0 %v2141_v56  ;;  %2240 = vmatpush.xpose.msrb.mxu1 %v2142_v62  ;;  %v2195_v18 = vmul.f32 %v2802_v8, %v4387_v50  ;;  %v2196_v15 = vmul.f32 %v2802_v8, %v4389_v58  ;;  %v2804_v63 = vpop.eup %2803  ;;  %2813 = vrcp.f32 %v4563_v54  ;;  %v4932_v54 = vld [vmem:[#allocation9_spill] sm:$0xff] }
 0x7cb   :  { %v2193_v27 = vmul.f32 %v2804_v63, %v4329_v5  ;;  %v2194_v34 = vmul.f32 %v2804_v63, %v4931_v44  ;;  %2815 = vrcp.f32 %v4565_v3 }
 0x7cc   :  { %v2806_v1 = vpop.eup %2805 }
 0x7cd   :  { %2221 = vmatmul.f32.vlgmr.msrb.gmra.mxu0 %v4580_v35  ;;  %2241 = vmatmul.f32.vlgmr.msrb.gmra.mxu1 %v4584_v36  ;;  %v2191_v47 = vmul.f32 %v2806_v1, %v4351_v10  ;;  %v2192_v50 = vmul.f32 %v2806_v1, %v4355_v37  ;;  %v2808_v24 = vpop.eup %2807  ;;  %v2072_v37 = vpop.xlane.xlu1 %2071 }
 0x7ce   :  { %2245 = vmatpush.xpose.msra.mxu0 %v2203_v28  ;;  %2265 = vmatpush.xpose.msra.mxu1 %v2204_v6  ;;  %v2189_v58 = vmul.f32 %v2808_v24, %v4417_v29  ;;  %v2190_v5 = vmul.f32 %v2808_v24, %v4419_v16  ;;  %v2810_v19 = vpop.eup %2809  ;;  %2817 = vrcp.f32 %v2072_v37 }
 0x7cf   :  { %v2187_v42 = vmul.f32 %v2810_v19, %v4409_v21  ;;  %v2188_v10 = vmul.f32 %v2810_v19, %v4413_v26  ;;  %v2812_v40 = vpop.eup %2811  ;;  %v4933_v21 = vld [vmem:[#allocation10_spill] sm:$0xff] }
 0x7d0   :  { %v2185_v30 = vmul.f32 %v2812_v40, %v4431_v60  ;;  %v2186_v29 = vmul.f32 %v2812_v40, %v4435_v33  ;;  %v2814_v16 = vpop.eup %2813 }
 0x7d1   :  { %v2183_v55 = vmul.f32 %v2814_v16, %v4932_v54  ;;  %v2184_v43 = vmul.f32 %v2814_v16, %v4933_v21  ;;  %v2816_v26 = vpop.eup %2815 }
 0x7d2   :  { %2246 = vmatpush.xpose.msra.mxu0 %v2201_v46  ;;  %2266 = vmatpush.xpose.msra.mxu1 %v2202_v9  ;;  %v2181_v3 = vmul.f32 %v2816_v26, %v4467_v17  ;;  %v2182_v60 = vmul.f32 %v2816_v26, %v4934_v31 }
 0x7d4   :  { %v2069_v39 = vpop.xlane.xlu0 %2068  ;;  %v2818_v38 = vpop.eup %2817 }
 0x7d5   :  { %2819 = vrcp.f32 %v2069_v39  ;;  %v2179_v49 = vmul.f32 %v2818_v38, %v4935_v32  ;;  %v2180_v61 = vmul.f32 %v2818_v38, %v4936_v52 }
 0x7d6   :  { %2247 = vmatpush.xpose.msra.mxu0 %v2199_v57  ;;  %2267 = vmatpush.xpose.msra.mxu1 %v2200_v53 }
 0x7da   :  { %2248 = vmatpush.xpose.msra.mxu0 %v2197_v14  ;;  %2268 = vmatpush.xpose.msra.mxu1 %v2198_v13 }
 0x7db   :  { %v2820_v56 = vpop.eup %2819 }
 0x7dc   :  { %v2066_v2 = vpop.xlane.xlu1 %2065  ;;  %v2177_v62 = vmul.f32 %v2820_v56, %v4499_v0  ;;  %v2178_v28 = vmul.f32 %v2820_v56, %v4501_v22 }
 0x7dd   :  { %2821 = vrcp.f32 %v2066_v2 }
 0x7de   :  { %2249 = vmatpush.xpose.msra.mxu0 %v2195_v18  ;;  %2269 = vmatpush.xpose.msra.mxu1 %v2196_v15 }
 0x7e2   :  { %2250 = vmatpush.xpose.msra.mxu0 %v2193_v27  ;;  %2270 = vmatpush.xpose.msra.mxu1 %v2194_v34 }
 0x7e3   :  { %v2822_v17 = vpop.eup %2821 }
 0x7e4   :  { %v2063_v33 = vpop.xlane.xlu2 %2062  ;;  %v2175_v6 = vmul.f32 %v2822_v17, %v4507_v7  ;;  %v2176_v59 = vmul.f32 %v2822_v17, %v4937_v12 }
 0x7e5   :  { %2823 = vrcp.f32 %v2063_v33 }
 0x7e6   :  { %2251 = vmatpush.xpose.msra.mxu0 %v2191_v47  ;;  %2271 = vmatpush.xpose.msra.mxu1 %v2192_v50 }
 0x7ea   :  { %2252 = vmatpush.xpose.msra.mxu0 %v2189_v58  ;;  %2272 = vmatpush.xpose.msra.mxu1 %v2190_v5 }
 0x7eb   :  { %v2824_v25 = vpop.eup %2823 }
 0x7ec   :  { %v2173_v46 = vmul.f32 %v2824_v25, %v4938_v20  ;;  %v2174_v9 = vmul.f32 %v2824_v25, %v4939_v11 }
 0x7ee   :  { %2253 = vmatpush.xpose.msra.mxu0 %v2187_v42  ;;  %2273 = vmatpush.xpose.msra.mxu1 %v2188_v10 }
 0x7f2   :  { %2254 = vmatpush.xpose.msra.mxu0 %v2185_v30  ;;  %2274 = vmatpush.xpose.msra.mxu1 %v2186_v29 }
 0x7f6   :  { %2255 = vmatpush.xpose.msra.mxu0 %v2183_v55  ;;  %2275 = vmatpush.xpose.msra.mxu1 %v2184_v43 }
 0x7fa   :  { %2256 = vmatpush.xpose.msra.mxu0 %v2181_v3  ;;  %2276 = vmatpush.xpose.msra.mxu1 %v2182_v60 }
 0x7fe   :  { %2257 = vmatpush.xpose.msra.mxu0 %v2179_v49  ;;  %2277 = vmatpush.xpose.msra.mxu1 %v2180_v61 }
 0x802   :  { %2258 = vmatpush.xpose.msra.mxu0 %v2177_v62  ;;  %2278 = vmatpush.xpose.msra.mxu1 %v2178_v28 }
 0x806   :  { %2259 = vmatpush.xpose.msra.mxu0 %v2175_v6  ;;  %2279 = vmatpush.xpose.msra.mxu1 %v2176_v59 }
 0x80a   :  { %2260 = vmatpush.xpose.msra.mxu0 %v2173_v46  ;;  %2280 = vmatpush.xpose.msra.mxu1 %v2174_v9 }
 0x80d   :  { %2261 = vmatmul.f32.vlgmr.msra.gmra.mxu0 %v4580_v35  ;;  %2281 = vmatmul.f32.vlgmr.msra.gmra.mxu1 %v4584_v36 }
 0x84a   :  { %v2222_v0 = vpop.f32.mrf.mxu0  ;;  %v2242_v22 = vpop.f32.mrf.mxu1 }
 0x84b   :  { %v2243_v57 = vadd.f32 %v2242_v22, %v2222_v0 }
 0x88a   :  { %v2262_v48 = vpop.f32.mrf.mxu0  ;;  %v2282_v51 = vpop.f32.mrf.mxu1 }
 0x88b   :  { %v2283_v7 = vadd.f32 %v2282_v51, %v2262_v48 }
 0x88d   :  { %v2287_v45 = vrot.slane %v2283_v7, 4 }
 0x88f   :  { %v2288_v53 = vsel %vm49_vm0, %v2243_v57, %v2287_v45 }
 0x890   :  { %2436 = vst [vmem:[%s4637_s4 + $0x8] sm:$0xff] %v2288_v53 }

</bundles_post_ra>
